<compile_context>
chip_gen: v6e
topology: v6e:2x2x1
jax: 0.10.0
libtpu: 0.0.40
codegen_flags: <defaults>
</compile_context>

<pallas_src>
import jax
import jax.numpy as jnp
from jax import lax
from jax.experimental import pallas as pl
from jax.experimental.pallas import tpu as pltpu


def _gru_bidir_kernel(embed_ref, len_ref, h0_ref, w_in_ref, whh_ref,
                      bgi_ref, bhn_ref, out_ref, gi_ref):
    """Fused bidirectional GRU recurrence over a length-sorted padded batch.

    embed_ref : (S*B, E)  bf16  time-major embeddings, rows t*B:(t+1)*B = step t
    len_ref   : (B, 1)    i32   valid lengths (sorted descending)
    h0_ref    : (B, 2H)   f32   initial hidden [h_fwd | h_bwd]
    w_in_ref  : (E, Gp)   bf16  input weights, cols [r_f,r_b,z_f,z_b,n_f,n_b,pad]
    whh_ref   : (2H, Gp)  bf16  block-diagonal recurrent weights (same col order)
    bgi_ref   : (1, Gp)   f32   bias folded into the hoisted input projection
    bhn_ref   : (1, 2H)   f32   b_hn for [fwd | bwd] (added inside r * (...))
    out_ref   : (B, H)    f32   h_fwd_final + h_bwd_final
    gi_ref    : (S*B, Gp) f32   VMEM scratch for the hoisted input projection
    """
    SB, _ = embed_ref.shape
    B = len_ref.shape[0]
    S = SB // B
    H2 = h0_ref.shape[-1]          # 2H
    H = H2 // 2
    G = 6 * H                      # valid gate columns (Gp - G is lane padding)

    # ---- stage 1a: hoist the input projection out of the recurrence --------
    # One MXU-friendly (S*B,E)x(E,Gp) bf16 matmul; biases folded in.
    gi_ref[...] = jnp.dot(embed_ref[...], w_in_ref[...],
                          preferred_element_type=jnp.float32) + bgi_ref[...]

    # ---- loop-invariant values (hoisted; JAX does not CSE broadcasts) ------
    lens = len_ref[...]                                     # (B, 1) i32
    whh = whh_ref[...]                                      # (2H, Gp) bf16
    bhn = jnp.broadcast_to(bhn_ref[...], (B, H2))           # (B, 2H) f32
    Gp = w_in_ref.shape[-1]
    cg = lax.broadcasted_iota(jnp.int32, (1, Gp), 1)
    col_bwd_g = (((cg >= H) & (cg < 2 * H)) |
                 ((cg >= 3 * H) & (cg < 4 * H)) |
                 ((cg >= 5 * H) & (cg < G)))                # backward-dir columns
    col_bwd_h = lax.broadcasted_iota(jnp.int32, (1, H2), 1) >= H

    # ---- stage 1b: pre-fold the fwd/bwd time interleave into gi ------------
    # In-place pairwise swap of the backward columns between row-blocks t and
    # S-1-t: afterwards block t holds [fwd gates of step t | bwd gates of step
    # S-1-t], so the serial recurrence needs one contiguous load and no select
    # per step.  (For odd S the middle block is already correct.)
    @pl.loop(0, S // 2)
    def _(t):
        t_rev = S - 1 - t
        lo = pl.ds(pl.multiple_of(t * B, B), B)
        hi = pl.ds(pl.multiple_of(t_rev * B, B), B)
        blk_lo = gi_ref[lo, :]
        blk_hi = gi_ref[hi, :]
        gi_ref[lo, :] = jnp.where(col_bwd_g, blk_hi, blk_lo)
        gi_ref[hi, :] = jnp.where(col_bwd_g, blk_lo, blk_hi)

    # ---- stage 2: the serial recurrence -------------------------------------
    def body(t, h):
        t_rev = S - 1 - t
        gi = gi_ref[pl.ds(pl.multiple_of(t * B, B), B), :]    # (B, Gp), one vld

        # single bf16 MXU push for both directions (block-diagonal whh),
        # f32 accumulation
        gh = jnp.dot(h.astype(jnp.bfloat16), whh,
                     preferred_element_type=jnp.float32)      # (B, Gp)

        # r,z of both directions: one EUP tanh pass (sigmoid via tanh identity)
        x_rz = gi[:, :4 * H] + gh[:, :4 * H]
        rz = 0.5 * jnp.tanh(0.5 * x_rz) + 0.5
        r = rz[:, :H2]
        z = rz[:, H2:]
        # n of both directions: one EUP tanh pass over the valid 2H columns
        n = jnp.tanh(gi[:, 4 * H:G] + r * (gh[:, 4 * H:G] + bhn))
        h_new = n + z * (h - n)                               # == (1-z)*n + z*h

        # packed-sequence semantics: only update while the step is valid
        thresh = jnp.where(col_bwd_h, t_rev, t)               # (1, 2H) i32
        return jnp.where(lens > thresh, h_new, h)             # single select

    h = lax.fori_loop(0, S, body, h0_ref[...], unroll=min(S, 8))

    # torch.sum(hidden, dim=0) over the 2 directions (num_layers == 1)
    out_ref[...] = h[:, :H] + h[:, H:]


def _pack_gru_params(params, H):
    """Repack per-direction PyTorch-layout GRU weights into the fused layout.

    Packed gate column order: [r_f, r_b, z_f, z_b, n_f, n_b, lane-pad-zeros],
    padded to the next multiple of 128 lanes.
    """
    Gp = ((6 * H + 127) // 128) * 128

    def g(w, k):                       # gate slice k in {0:r, 1:z, 2:n}
        return w[..., k * H:(k + 1) * H]

    wif, wib = params["wih_f"], params["wih_b"]              # (E, 3H)
    w_in = jnp.concatenate([g(wif, 0), g(wib, 0), g(wif, 1), g(wib, 1),
                            g(wif, 2), g(wib, 2)], axis=-1)              # (E, 6H)

    whf, whb = params["whh_f"], params["whh_b"]              # (H, 3H)
    zH = jnp.zeros((H, H), jnp.float32)
    top = jnp.concatenate([g(whf, 0), zH, g(whf, 1), zH, g(whf, 2), zH], axis=-1)
    bot = jnp.concatenate([zH, g(whb, 0), zH, g(whb, 1), zH, g(whb, 2)], axis=-1)
    whh_blk = jnp.concatenate([top, bot], axis=0)                        # (2H, 6H)

    bif, bib = params["bih_f"], params["bih_b"]              # (1, 3H)
    bhf, bhb = params["bhh_f"], params["bhh_b"]
    # b_ih (all gates) + b_hh (r,z only) fold into the hoisted projection.
    b_gi = jnp.concatenate([g(bif, 0) + g(bhf, 0), g(bib, 0) + g(bhb, 0),
                            g(bif, 1) + g(bhf, 1), g(bib, 1) + g(bhb, 1),
                            g(bif, 2), g(bib, 2)], axis=-1)              # (1, 6H)
    b_hn = jnp.concatenate([g(bhf, 2), g(bhb, 2)], axis=-1)              # (1, 2H)

    pad = Gp - 6 * H
    if pad:
        w_in = jnp.pad(w_in, ((0, 0), (0, pad)))
        whh_blk = jnp.pad(whh_blk, ((0, 0), (0, pad)))
        b_gi = jnp.pad(b_gi, ((0, 0), (0, pad)))

    return (w_in.astype(jnp.bfloat16), whh_blk.astype(jnp.bfloat16),
            b_gi.astype(jnp.float32), b_hn.astype(jnp.float32))


def gru_bidir_pallas(embed_2d, lens_b1, h0_cat, w_in, whh_blk, b_gi, b_hn):
    SB, _ = embed_2d.shape
    B = lens_b1.shape[0]
    H = h0_cat.shape[-1] // 2
    Gp = w_in.shape[-1]

    vmem = pl.BlockSpec(memory_space=pltpu.MemorySpace.VMEM)

    # VMEM budget sized to the actual buffers; cap derived from the chip.
    nbytes = (embed_2d.size * embed_2d.dtype.itemsize            # embeddings (bf16)
              + SB * Gp * 4                                      # gi scratch (f32)
              + w_in.size * 2 + whh_blk.size * 2                 # bf16 weights
              + (b_gi.size + b_hn.size + h0_cat.size + B * H) * 4
              + lens_b1.size * 4)
    try:
        cap = int(pltpu.get_tpu_info().vmem_capacity_bytes)
    except Exception:                                            # conservative fallback
        cap = 64 << 20
    vmem_limit = int(min(max(2 * nbytes + (1 << 20), 16 << 20), cap - (12 << 20)))

    # TODO(synk): for very long sequences / large E on v7x, stream embed/gi in
    # chunks (memory_space=pl.ANY + emit_pipeline) instead of whole-array
    # residency; unnecessary at these sizes.
    return pl.pallas_call(
        _gru_bidir_kernel,
        out_shape=jax.ShapeDtypeStruct((B, H), jnp.float32),
        in_specs=[vmem] * 7,
        out_specs=vmem,
        scratch_shapes=[pltpu.VMEM((SB, Gp), jnp.float32)],
        compiler_params=pltpu.CompilerParams(vmem_limit_bytes=vmem_limit),
    )(embed_2d, lens_b1, h0_cat, w_in, whh_blk, b_gi, b_hn)


def rnn_encoder_forward(x, lengths, h0, params):
    """Reproduces RNNEncoder.forward: returns (B, H) summed final hiddens."""
    B, S = x.shape
    H = params["whh_f"].shape[0]
    # TODO(synk): pad the batch to a multiple of 8 (f32 sublane) for general B.
    assert B % 8 == 0, "batch must be a multiple of 8 (f32 sublane alignment)"

    # sort by length descending (as required by pack_padded_sequence)
    idx_sort = jnp.argsort(-lengths)
    idx_unsort = jnp.argsort(idx_sort)
    x_sorted = x[idx_sort]
    lens_sorted = lengths[idx_sort]

    # embedding lookup directly in time-major order from a bf16 table:
    # no (B,S,E) materialize, no transpose pass, half the gather bytes.
    # TODO(synk): the gather could move in-kernel via scalar-prefetched token
    # ids and DMA row gathers from the HBM embedding table.
    emb_table = params["embedding"].astype(jnp.bfloat16)
    tok_tm = x_sorted.T.reshape(-1)                                # (S*B,) time-major
    emb_2d = jnp.take(emb_table, tok_tm, axis=0)                   # (S*B, E) bf16

    lens_b1 = lens_sorted.reshape(B, 1).astype(jnp.int32)

    # permute the initial hidden by the length-sort as well (correctness)
    h0_s = h0[:, idx_sort, :].astype(jnp.float32)                  # (2, B, H)
    h0_cat = jnp.concatenate([h0_s[0], h0_s[1]], axis=-1)          # (B, 2H)

    w_in, whh_blk, b_gi, b_hn = _pack_gru_params(params, H)
    hidden = gru_bidir_pallas(emb_2d, lens_b1, h0_cat, w_in, whh_blk, b_gi, b_hn)
    # undo the length-sort
    return hidden[idx_unsort]


def make_params(key, vocab_size, emb_size, hidden_size, padding_idx):
    ks = jax.random.split(key, 10)
    scale = 1.0 / jnp.sqrt(hidden_size)
    emb = jax.random.normal(ks[0], (vocab_size, emb_size), jnp.float32)
    emb = emb.at[padding_idx].set(0.0)   # nn.Embedding zeroes the padding row

    def u(k, shape):
        return jax.random.uniform(k, shape, jnp.float32, -scale, scale)

    H3 = 3 * hidden_size
    return {
        "embedding": emb,
        # stored pre-transposed: x @ W_ih^T == x @ wih  with wih (E, 3H)
        "wih_f": u(ks[1], (emb_size, H3)),
        "whh_f": u(ks[2], (hidden_size, H3)),
        "bih_f": u(ks[3], (1, H3)),
        "bhh_f": u(ks[4], (1, H3)),
        "wih_b": u(ks[5], (emb_size, H3)),
        "whh_b": u(ks[6], (hidden_size, H3)),
        "bih_b": u(ks[7], (1, H3)),
        "bhh_b": u(ks[8], (1, H3)),
    }


if __name__ == "__main__":
    VOCAB, EMB, HID, PAD = 50, 32, 32, 0
    B, S = 8, 8

    key = jax.random.PRNGKey(0)
    k_par, k_tok, k_len, k_h0 = jax.random.split(key, 4)

    params = make_params(k_par, VOCAB, EMB, HID, PAD)

    lengths = jax.random.randint(k_len, (B,), 2, S + 1, dtype=jnp.int32)
    tokens = jax.random.randint(k_tok, (B, S), 1, VOCAB, dtype=jnp.int32)
    # pad positions beyond each sequence length with padding_idx
    pos = jnp.arange(S)[None, :]
    x = jnp.where(pos < lengths[:, None], tokens, PAD)

    # TODO(synk): reference init_hidden is a non-deterministic randn per call;
    # a fixed-seed draw is used here instead.
    h0 = jax.random.normal(k_h0, (2, B, HID), jnp.float32)

    out = rnn_encoder_forward(x, lengths, h0, params)
    out = jax.block_until_ready(out)
    assert out.shape == (B, HID)
    assert bool(jnp.all(jnp.isfinite(out)))
    print("KERNEL_OK")
</pallas_src>

<mosaic_0001>
module attributes {stable_mosaic.version = 11 : i64} {
  func.func @_gru_bidir_kernel(%arg0: memref<64x32xbf16, #tpu.memory_space<vmem>>, %arg1: memref<8x1xi32, #tpu.memory_space<vmem>>, %arg2: memref<8x64xf32, #tpu.memory_space<vmem>>, %arg3: memref<32x256xbf16, #tpu.memory_space<vmem>>, %arg4: memref<64x256xbf16, #tpu.memory_space<vmem>>, %arg5: memref<1x256xf32, #tpu.memory_space<vmem>>, %arg6: memref<1x64xf32, #tpu.memory_space<vmem>>, %arg7: memref<8x32xf32, #tpu.memory_space<vmem>>, %arg8: memref<64x256xf32, #tpu.memory_space<vmem>>) attributes {dimension_semantics = [], scalar_prefetch = 0 : i64, scratch_operands = 1 : i64, tpu.core_type = #tpu.core_type<tc>} {
    %c0 = arith.constant 0 : index
    %c0_0 = arith.constant 0 : index
    %0 = vector.load %arg0[%c0, %c0_0] : memref<64x32xbf16, #tpu.memory_space<vmem>>, vector<64x32xbf16>
    %c0_1 = arith.constant 0 : index
    %c0_2 = arith.constant 0 : index
    %1 = vector.load %arg3[%c0_1, %c0_2] : memref<32x256xbf16, #tpu.memory_space<vmem>>, vector<32x256xbf16>
    %cst = arith.constant dense<0.000000e+00> : vector<64x256xf32>
    %2 = tpu.matmul %0, %1, %cst {dimension_numbers = #tpu.dot_dimension_numbers<[1], [0], [0], [1], [0, 0, 1, 1], [], []>} : vector<64x32xbf16>, vector<32x256xbf16>, vector<64x256xf32> -> vector<64x256xf32>
    %c0_3 = arith.constant 0 : index
    %c0_4 = arith.constant 0 : index
    %3 = vector.load %arg5[%c0_3, %c0_4] : memref<1x256xf32, #tpu.memory_space<vmem>>, vector<1x256xf32>
    %4 = vector.broadcast %3 : vector<1x256xf32> to vector<64x256xf32>
    %5 = arith.addf %2, %4 : vector<64x256xf32>
    %c0_5 = arith.constant 0 : index
    %c0_6 = arith.constant 0 : index
    %6 = vector.load %arg8[%c0_5, %c0_6] : memref<64x256xf32, #tpu.memory_space<vmem>>, vector<64x256xf32>
    tpu.vector_store %arg8[%c0_5, %c0_6], %5 {strides = array<i32>} : memref<64x256xf32, #tpu.memory_space<vmem>>, vector<64x256xf32>,
    %c0_7 = arith.constant 0 : index
    %c0_8 = arith.constant 0 : index
    %7 = vector.load %arg1[%c0_7, %c0_8] : memref<8x1xi32, #tpu.memory_space<vmem>>, vector<8x1xi32>
    %c0_9 = arith.constant 0 : index
    %c0_10 = arith.constant 0 : index
    %8 = vector.load %arg4[%c0_9, %c0_10] : memref<64x256xbf16, #tpu.memory_space<vmem>>, vector<64x256xbf16>
    %c0_11 = arith.constant 0 : index
    %c0_12 = arith.constant 0 : index
    %9 = vector.load %arg6[%c0_11, %c0_12] : memref<1x64xf32, #tpu.memory_space<vmem>>, vector<1x64xf32>
    %10 = vector.shape_cast %9 : vector<1x64xf32> to vector<1x64xf32>
    %11 = vector.broadcast %10 : vector<1x64xf32> to vector<8x64xf32>
    %12 = tpu.iota {dimensions = array<i32: 1>} : vector<1x256xi32>
    %c32_i32 = arith.constant 32 : i32
    %13 = vector.broadcast %c32_i32 : i32 to vector<1x256xi32>
    %14 = arith.cmpi sge, %12, %13 : vector<1x256xi32>
    %c64_i32 = arith.constant 64 : i32
    %15 = vector.broadcast %c64_i32 : i32 to vector<1x256xi32>
    %16 = arith.cmpi slt, %12, %15 : vector<1x256xi32>
    %17 = arith.andi %14, %16 : vector<1x256xi1>
    %c96_i32 = arith.constant 96 : i32
    %18 = vector.broadcast %c96_i32 : i32 to vector<1x256xi32>
    %19 = arith.cmpi sge, %12, %18 : vector<1x256xi32>
    %c128_i32 = arith.constant 128 : i32
    %20 = vector.broadcast %c128_i32 : i32 to vector<1x256xi32>
    %21 = arith.cmpi slt, %12, %20 : vector<1x256xi32>
    %22 = arith.andi %19, %21 : vector<1x256xi1>
    %23 = arith.ori %17, %22 : vector<1x256xi1>
    %c160_i32 = arith.constant 160 : i32
    %24 = vector.broadcast %c160_i32 : i32 to vector<1x256xi32>
    %25 = arith.cmpi sge, %12, %24 : vector<1x256xi32>
    %c192_i32 = arith.constant 192 : i32
    %26 = vector.broadcast %c192_i32 : i32 to vector<1x256xi32>
    %27 = arith.cmpi slt, %12, %26 : vector<1x256xi32>
    %28 = arith.andi %25, %27 : vector<1x256xi1>
    %29 = arith.ori %23, %28 : vector<1x256xi1>
    %30 = tpu.iota {dimensions = array<i32: 1>} : vector<1x64xi32>
    %c32_i32_13 = arith.constant 32 : i32
    %31 = vector.broadcast %c32_i32_13 : i32 to vector<1x64xi32>
    %32 = arith.cmpi sge, %30, %31 : vector<1x64xi32>
    %c0_i32 = arith.constant 0 : i32
    %c4_i32 = arith.constant 4 : i32
    %33 = arith.addi %c0_i32, %c4_i32 : i32
    %c1_i32 = arith.constant 1 : i32
    scf.for %arg9 = %c0_i32 to %33 step %c1_i32  : i32 {
      %c1_i32_78 = arith.constant 1 : i32
      %319 = arith.muli %arg9, %c1_i32_78 : i32
      %c0_i32_79 = arith.constant 0 : i32
      %320 = arith.addi %c0_i32_79, %319 : i32
      %c7_i32_80 = arith.constant 7 : i32
      %321 = arith.subi %c7_i32_80, %320 : i32
      %c8_i32_81 = arith.constant 8 : i32
      %322 = arith.muli %320, %c8_i32_81 : i32
      %323 = tpu.assume_multiple %322, 8 : i32
      %c8_i32_82 = arith.constant 8 : i32
      %324 = arith.muli %321, %c8_i32_82 : i32
      %325 = tpu.assume_multiple %324, 8 : i32
      %326 = arith.index_cast %323 : i32 to index
      %c0_83 = arith.constant 0 : index
      %327 = vector.load %arg8[%326, %c0_83] : memref<64x256xf32, #tpu.memory_space<vmem>>, vector<8x256xf32>
      %328 = arith.index_cast %325 : i32 to index
      %c0_84 = arith.constant 0 : index
      %329 = vector.load %arg8[%328, %c0_84] : memref<64x256xf32, #tpu.memory_space<vmem>>, vector<8x256xf32>
      %330 = vector.shape_cast %29 : vector<1x256xi1> to vector<1x256xi1>
      %331 = vector.broadcast %330 : vector<1x256xi1> to vector<8x256xi1>
      %332 = arith.select %331, %329, %327 : vector<8x256xi1>, vector<8x256xf32>
      %333 = arith.index_cast %323 : i32 to index
      %c0_85 = arith.constant 0 : index
      %334 = vector.load %arg8[%333, %c0_85] : memref<64x256xf32, #tpu.memory_space<vmem>>, vector<8x256xf32>
      tpu.vector_store %arg8[%333, %c0_85], %332 {strides = array<i32>} : memref<64x256xf32, #tpu.memory_space<vmem>>, vector<8x256xf32>,
      %335 = vector.shape_cast %29 : vector<1x256xi1> to vector<1x256xi1>
      %336 = vector.broadcast %335 : vector<1x256xi1> to vector<8x256xi1>
      %337 = arith.select %336, %327, %329 : vector<8x256xi1>, vector<8x256xf32>
      %338 = arith.index_cast %325 : i32 to index
      %c0_86 = arith.constant 0 : index
      %339 = vector.load %arg8[%338, %c0_86] : memref<64x256xf32, #tpu.memory_space<vmem>>, vector<8x256xf32>
      tpu.vector_store %arg8[%338, %c0_86], %337 {strides = array<i32>} : memref<64x256xf32, #tpu.memory_space<vmem>>, vector<8x256xf32>,
    }
    %c4_i32_14 = arith.constant 4 : i32
    %c0_15 = arith.constant 0 : index
    %c0_16 = arith.constant 0 : index
    %34 = vector.load %arg2[%c0_15, %c0_16] : memref<8x64xf32, #tpu.memory_space<vmem>>, vector<8x64xf32>
    %c0_i32_17 = arith.constant 0 : i32
    %c7_i32 = arith.constant 7 : i32
    %35 = arith.subi %c7_i32, %c0_i32_17 : i32
    %c8_i32 = arith.constant 8 : i32
    %36 = arith.muli %c0_i32_17, %c8_i32 : i32
    %37 = tpu.assume_multiple %36, 8 : i32
    %38 = arith.index_cast %37 : i32 to index
    %c0_18 = arith.constant 0 : index
    %39 = vector.load %arg8[%38, %c0_18] : memref<64x256xf32, #tpu.memory_space<vmem>>, vector<8x256xf32>
    %40 = arith.truncf %34 : vector<8x64xf32> to vector<8x64xbf16>
    %cst_19 = arith.constant dense<0.000000e+00> : vector<8x256xf32>
    %41 = tpu.matmul %40, %8, %cst_19 {dimension_numbers = #tpu.dot_dimension_numbers<[1], [0], [0], [1], [0, 0, 1, 1], [], []>} : vector<8x64xbf16>, vector<64x256xbf16>, vector<8x256xf32> -> vector<8x256xf32>
    %42 = vector.extract_strided_slice %39 {offsets = [0, 0], sizes = [8, 128], strides = [1, 1]} : vector<8x256xf32> to vector<8x128xf32>
    %43 = vector.extract_strided_slice %41 {offsets = [0, 0], sizes = [8, 128], strides = [1, 1]} : vector<8x256xf32> to vector<8x128xf32>
    %44 = arith.addf %42, %43 : vector<8x128xf32>
    %cst_20 = arith.constant 5.000000e-01 : f32
    %45 = vector.broadcast %cst_20 : f32 to vector<8x128xf32>
    %46 = arith.mulf %45, %44 : vector<8x128xf32>
    %47 = math.tanh %46 : vector<8x128xf32>
    %cst_21 = arith.constant 5.000000e-01 : f32
    %48 = vector.broadcast %cst_21 : f32 to vector<8x128xf32>
    %49 = arith.mulf %48, %47 : vector<8x128xf32>
    %cst_22 = arith.constant 5.000000e-01 : f32
    %50 = vector.broadcast %cst_22 : f32 to vector<8x128xf32>
    %51 = arith.addf %49, %50 : vector<8x128xf32>
    %52 = vector.extract_strided_slice %51 {offsets = [0, 0], sizes = [8, 64], strides = [1, 1]} : vector<8x128xf32> to vector<8x64xf32>
    %53 = vector.extract_strided_slice %51 {offsets = [0, 64], sizes = [8, 64], strides = [1, 1]} : vector<8x128xf32> to vector<8x64xf32>
    %54 = vector.extract_strided_slice %39 {offsets = [0, 128], sizes = [8, 64], strides = [1, 1]} : vector<8x256xf32> to vector<8x64xf32>
    %55 = vector.extract_strided_slice %41 {offsets = [0, 128], sizes = [8, 64], strides = [1, 1]} : vector<8x256xf32> to vector<8x64xf32>
    %56 = arith.addf %55, %11 : vector<8x64xf32>
    %57 = arith.mulf %52, %56 : vector<8x64xf32>
    %58 = arith.addf %54, %57 : vector<8x64xf32>
    %59 = math.tanh %58 : vector<8x64xf32>
    %60 = arith.subf %34, %59 : vector<8x64xf32>
    %61 = arith.mulf %53, %60 : vector<8x64xf32>
    %62 = arith.addf %59, %61 : vector<8x64xf32>
    %63 = vector.broadcast %35 : i32 to vector<1x64xi32>
    %64 = vector.broadcast %c0_i32_17 : i32 to vector<1x64xi32>
    %65 = arith.select %32, %63, %64 : vector<1x64xi1>, vector<1x64xi32>
    %66 = vector.broadcast %7 : vector<8x1xi32> to vector<8x64xi32>
    %67 = vector.broadcast %65 : vector<1x64xi32> to vector<8x64xi32>
    %68 = arith.cmpi sgt, %66, %67 : vector<8x64xi32>
    %69 = arith.select %68, %62, %34 : vector<8x64xi1>, vector<8x64xf32>
    %c1_i32_23 = arith.constant 1 : i32
    %c7_i32_24 = arith.constant 7 : i32
    %70 = arith.subi %c7_i32_24, %c1_i32_23 : i32
    %c8_i32_25 = arith.constant 8 : i32
    %71 = arith.muli %c1_i32_23, %c8_i32_25 : i32
    %72 = tpu.assume_multiple %71, 8 : i32
    %73 = arith.index_cast %72 : i32 to index
    %c0_26 = arith.constant 0 : index
    %74 = vector.load %arg8[%73, %c0_26] : memref<64x256xf32, #tpu.memory_space<vmem>>, vector<8x256xf32>
    %75 = arith.truncf %69 : vector<8x64xf32> to vector<8x64xbf16>
    %cst_27 = arith.constant dense<0.000000e+00> : vector<8x256xf32>
    %76 = tpu.matmul %75, %8, %cst_27 {dimension_numbers = #tpu.dot_dimension_numbers<[1], [0], [0], [1], [0, 0, 1, 1], [], []>} : vector<8x64xbf16>, vector<64x256xbf16>, vector<8x256xf32> -> vector<8x256xf32>
    %77 = vector.extract_strided_slice %74 {offsets = [0, 0], sizes = [8, 128], strides = [1, 1]} : vector<8x256xf32> to vector<8x128xf32>
    %78 = vector.extract_strided_slice %76 {offsets = [0, 0], sizes = [8, 128], strides = [1, 1]} : vector<8x256xf32> to vector<8x128xf32>
    %79 = arith.addf %77, %78 : vector<8x128xf32>
    %cst_28 = arith.constant 5.000000e-01 : f32
    %80 = vector.broadcast %cst_28 : f32 to vector<8x128xf32>
    %81 = arith.mulf %80, %79 : vector<8x128xf32>
    %82 = math.tanh %81 : vector<8x128xf32>
    %cst_29 = arith.constant 5.000000e-01 : f32
    %83 = vector.broadcast %cst_29 : f32 to vector<8x128xf32>
    %84 = arith.mulf %83, %82 : vector<8x128xf32>
    %cst_30 = arith.constant 5.000000e-01 : f32
    %85 = vector.broadcast %cst_30 : f32 to vector<8x128xf32>
    %86 = arith.addf %84, %85 : vector<8x128xf32>
    %87 = vector.extract_strided_slice %86 {offsets = [0, 0], sizes = [8, 64], strides = [1, 1]} : vector<8x128xf32> to vector<8x64xf32>
    %88 = vector.extract_strided_slice %86 {offsets = [0, 64], sizes = [8, 64], strides = [1, 1]} : vector<8x128xf32> to vector<8x64xf32>
    %89 = vector.extract_strided_slice %74 {offsets = [0, 128], sizes = [8, 64], strides = [1, 1]} : vector<8x256xf32> to vector<8x64xf32>
    %90 = vector.extract_strided_slice %76 {offsets = [0, 128], sizes = [8, 64], strides = [1, 1]} : vector<8x256xf32> to vector<8x64xf32>
    %91 = arith.addf %90, %11 : vector<8x64xf32>
    %92 = arith.mulf %87, %91 : vector<8x64xf32>
    %93 = arith.addf %89, %92 : vector<8x64xf32>
    %94 = math.tanh %93 : vector<8x64xf32>
    %95 = arith.subf %69, %94 : vector<8x64xf32>
    %96 = arith.mulf %88, %95 : vector<8x64xf32>
    %97 = arith.addf %94, %96 : vector<8x64xf32>
    %98 = vector.broadcast %70 : i32 to vector<1x64xi32>
    %99 = vector.broadcast %c1_i32_23 : i32 to vector<1x64xi32>
    %100 = arith.select %32, %98, %99 : vector<1x64xi1>, vector<1x64xi32>
    %101 = vector.broadcast %7 : vector<8x1xi32> to vector<8x64xi32>
    %102 = vector.broadcast %100 : vector<1x64xi32> to vector<8x64xi32>
    %103 = arith.cmpi sgt, %101, %102 : vector<8x64xi32>
    %104 = arith.select %103, %97, %69 : vector<8x64xi1>, vector<8x64xf32>
    %c2_i32 = arith.constant 2 : i32
    %c7_i32_31 = arith.constant 7 : i32
    %105 = arith.subi %c7_i32_31, %c2_i32 : i32
    %c8_i32_32 = arith.constant 8 : i32
    %106 = arith.muli %c2_i32, %c8_i32_32 : i32
    %107 = tpu.assume_multiple %106, 8 : i32
    %108 = arith.index_cast %107 : i32 to index
    %c0_33 = arith.constant 0 : index
    %109 = vector.load %arg8[%108, %c0_33] : memref<64x256xf32, #tpu.memory_space<vmem>>, vector<8x256xf32>
    %110 = arith.truncf %104 : vector<8x64xf32> to vector<8x64xbf16>
    %cst_34 = arith.constant dense<0.000000e+00> : vector<8x256xf32>
    %111 = tpu.matmul %110, %8, %cst_34 {dimension_numbers = #tpu.dot_dimension_numbers<[1], [0], [0], [1], [0, 0, 1, 1], [], []>} : vector<8x64xbf16>, vector<64x256xbf16>, vector<8x256xf32> -> vector<8x256xf32>
    %112 = vector.extract_strided_slice %109 {offsets = [0, 0], sizes = [8, 128], strides = [1, 1]} : vector<8x256xf32> to vector<8x128xf32>
    %113 = vector.extract_strided_slice %111 {offsets = [0, 0], sizes = [8, 128], strides = [1, 1]} : vector<8x256xf32> to vector<8x128xf32>
    %114 = arith.addf %112, %113 : vector<8x128xf32>
    %cst_35 = arith.constant 5.000000e-01 : f32
    %115 = vector.broadcast %cst_35 : f32 to vector<8x128xf32>
    %116 = arith.mulf %115, %114 : vector<8x128xf32>
    %117 = math.tanh %116 : vector<8x128xf32>
    %cst_36 = arith.constant 5.000000e-01 : f32
    %118 = vector.broadcast %cst_36 : f32 to vector<8x128xf32>
    %119 = arith.mulf %118, %117 : vector<8x128xf32>
    %cst_37 = arith.constant 5.000000e-01 : f32
    %120 = vector.broadcast %cst_37 : f32 to vector<8x128xf32>
    %121 = arith.addf %119, %120 : vector<8x128xf32>
    %122 = vector.extract_strided_slice %121 {offsets = [0, 0], sizes = [8, 64], strides = [1, 1]} : vector<8x128xf32> to vector<8x64xf32>
    %123 = vector.extract_strided_slice %121 {offsets = [0, 64], sizes = [8, 64], strides = [1, 1]} : vector<8x128xf32> to vector<8x64xf32>
    %124 = vector.extract_strided_slice %109 {offsets = [0, 128], sizes = [8, 64], strides = [1, 1]} : vector<8x256xf32> to vector<8x64xf32>
    %125 = vector.extract_strided_slice %111 {offsets = [0, 128], sizes = [8, 64], strides = [1, 1]} : vector<8x256xf32> to vector<8x64xf32>
    %126 = arith.addf %125, %11 : vector<8x64xf32>
    %127 = arith.mulf %122, %126 : vector<8x64xf32>
    %128 = arith.addf %124, %127 : vector<8x64xf32>
    %129 = math.tanh %128 : vector<8x64xf32>
    %130 = arith.subf %104, %129 : vector<8x64xf32>
    %131 = arith.mulf %123, %130 : vector<8x64xf32>
    %132 = arith.addf %129, %131 : vector<8x64xf32>
    %133 = vector.broadcast %105 : i32 to vector<1x64xi32>
    %134 = vector.broadcast %c2_i32 : i32 to vector<1x64xi32>
    %135 = arith.select %32, %133, %134 : vector<1x64xi1>, vector<1x64xi32>
    %136 = vector.broadcast %7 : vector<8x1xi32> to vector<8x64xi32>
    %137 = vector.broadcast %135 : vector<1x64xi32> to vector<8x64xi32>
    %138 = arith.cmpi sgt, %136, %137 : vector<8x64xi32>
    %139 = arith.select %138, %132, %104 : vector<8x64xi1>, vector<8x64xf32>
    %c3_i32 = arith.constant 3 : i32
    %c7_i32_38 = arith.constant 7 : i32
    %140 = arith.subi %c7_i32_38, %c3_i32 : i32
    %c8_i32_39 = arith.constant 8 : i32
    %141 = arith.muli %c3_i32, %c8_i32_39 : i32
    %142 = tpu.assume_multiple %141, 8 : i32
    %143 = arith.index_cast %142 : i32 to index
    %c0_40 = arith.constant 0 : index
    %144 = vector.load %arg8[%143, %c0_40] : memref<64x256xf32, #tpu.memory_space<vmem>>, vector<8x256xf32>
    %145 = arith.truncf %139 : vector<8x64xf32> to vector<8x64xbf16>
    %cst_41 = arith.constant dense<0.000000e+00> : vector<8x256xf32>
    %146 = tpu.matmul %145, %8, %cst_41 {dimension_numbers = #tpu.dot_dimension_numbers<[1], [0], [0], [1], [0, 0, 1, 1], [], []>} : vector<8x64xbf16>, vector<64x256xbf16>, vector<8x256xf32> -> vector<8x256xf32>
    %147 = vector.extract_strided_slice %144 {offsets = [0, 0], sizes = [8, 128], strides = [1, 1]} : vector<8x256xf32> to vector<8x128xf32>
    %148 = vector.extract_strided_slice %146 {offsets = [0, 0], sizes = [8, 128], strides = [1, 1]} : vector<8x256xf32> to vector<8x128xf32>
    %149 = arith.addf %147, %148 : vector<8x128xf32>
    %cst_42 = arith.constant 5.000000e-01 : f32
    %150 = vector.broadcast %cst_42 : f32 to vector<8x128xf32>
    %151 = arith.mulf %150, %149 : vector<8x128xf32>
    %152 = math.tanh %151 : vector<8x128xf32>
    %cst_43 = arith.constant 5.000000e-01 : f32
    %153 = vector.broadcast %cst_43 : f32 to vector<8x128xf32>
    %154 = arith.mulf %153, %152 : vector<8x128xf32>
    %cst_44 = arith.constant 5.000000e-01 : f32
    %155 = vector.broadcast %cst_44 : f32 to vector<8x128xf32>
    %156 = arith.addf %154, %155 : vector<8x128xf32>
    %157 = vector.extract_strided_slice %156 {offsets = [0, 0], sizes = [8, 64], strides = [1, 1]} : vector<8x128xf32> to vector<8x64xf32>
    %158 = vector.extract_strided_slice %156 {offsets = [0, 64], sizes = [8, 64], strides = [1, 1]} : vector<8x128xf32> to vector<8x64xf32>
    %159 = vector.extract_strided_slice %144 {offsets = [0, 128], sizes = [8, 64], strides = [1, 1]} : vector<8x256xf32> to vector<8x64xf32>
    %160 = vector.extract_strided_slice %146 {offsets = [0, 128], sizes = [8, 64], strides = [1, 1]} : vector<8x256xf32> to vector<8x64xf32>
    %161 = arith.addf %160, %11 : vector<8x64xf32>
    %162 = arith.mulf %157, %161 : vector<8x64xf32>
    %163 = arith.addf %159, %162 : vector<8x64xf32>
    %164 = math.tanh %163 : vector<8x64xf32>
    %165 = arith.subf %139, %164 : vector<8x64xf32>
    %166 = arith.mulf %158, %165 : vector<8x64xf32>
    %167 = arith.addf %164, %166 : vector<8x64xf32>
    %168 = vector.broadcast %140 : i32 to vector<1x64xi32>
    %169 = vector.broadcast %c3_i32 : i32 to vector<1x64xi32>
    %170 = arith.select %32, %168, %169 : vector<1x64xi1>, vector<1x64xi32>
    %171 = vector.broadcast %7 : vector<8x1xi32> to vector<8x64xi32>
    %172 = vector.broadcast %170 : vector<1x64xi32> to vector<8x64xi32>
    %173 = arith.cmpi sgt, %171, %172 : vector<8x64xi32>
    %174 = arith.select %173, %167, %139 : vector<8x64xi1>, vector<8x64xf32>
    %c4_i32_45 = arith.constant 4 : i32
    %c7_i32_46 = arith.constant 7 : i32
    %175 = arith.subi %c7_i32_46, %c4_i32_45 : i32
    %c8_i32_47 = arith.constant 8 : i32
    %176 = arith.muli %c4_i32_45, %c8_i32_47 : i32
    %177 = tpu.assume_multiple %176, 8 : i32
    %178 = arith.index_cast %177 : i32 to index
    %c0_48 = arith.constant 0 : index
    %179 = vector.load %arg8[%178, %c0_48] : memref<64x256xf32, #tpu.memory_space<vmem>>, vector<8x256xf32>
    %180 = arith.truncf %174 : vector<8x64xf32> to vector<8x64xbf16>
    %cst_49 = arith.constant dense<0.000000e+00> : vector<8x256xf32>
    %181 = tpu.matmul %180, %8, %cst_49 {dimension_numbers = #tpu.dot_dimension_numbers<[1], [0], [0], [1], [0, 0, 1, 1], [], []>} : vector<8x64xbf16>, vector<64x256xbf16>, vector<8x256xf32> -> vector<8x256xf32>
    %182 = vector.extract_strided_slice %179 {offsets = [0, 0], sizes = [8, 128], strides = [1, 1]} : vector<8x256xf32> to vector<8x128xf32>
    %183 = vector.extract_strided_slice %181 {offsets = [0, 0], sizes = [8, 128], strides = [1, 1]} : vector<8x256xf32> to vector<8x128xf32>
    %184 = arith.addf %182, %183 : vector<8x128xf32>
    %cst_50 = arith.constant 5.000000e-01 : f32
    %185 = vector.broadcast %cst_50 : f32 to vector<8x128xf32>
    %186 = arith.mulf %185, %184 : vector<8x128xf32>
    %187 = math.tanh %186 : vector<8x128xf32>
    %cst_51 = arith.constant 5.000000e-01 : f32
    %188 = vector.broadcast %cst_51 : f32 to vector<8x128xf32>
    %189 = arith.mulf %188, %187 : vector<8x128xf32>
    %cst_52 = arith.constant 5.000000e-01 : f32
    %190 = vector.broadcast %cst_52 : f32 to vector<8x128xf32>
    %191 = arith.addf %189, %190 : vector<8x128xf32>
    %192 = vector.extract_strided_slice %191 {offsets = [0, 0], sizes = [8, 64], strides = [1, 1]} : vector<8x128xf32> to vector<8x64xf32>
    %193 = vector.extract_strided_slice %191 {offsets = [0, 64], sizes = [8, 64], strides = [1, 1]} : vector<8x128xf32> to vector<8x64xf32>
    %194 = vector.extract_strided_slice %179 {offsets = [0, 128], sizes = [8, 64], strides = [1, 1]} : vector<8x256xf32> to vector<8x64xf32>
    %195 = vector.extract_strided_slice %181 {offsets = [0, 128], sizes = [8, 64], strides = [1, 1]} : vector<8x256xf32> to vector<8x64xf32>
    %196 = arith.addf %195, %11 : vector<8x64xf32>
    %197 = arith.mulf %192, %196 : vector<8x64xf32>
    %198 = arith.addf %194, %197 : vector<8x64xf32>
    %199 = math.tanh %198 : vector<8x64xf32>
    %200 = arith.subf %174, %199 : vector<8x64xf32>
    %201 = arith.mulf %193, %200 : vector<8x64xf32>
    %202 = arith.addf %199, %201 : vector<8x64xf32>
    %203 = vector.broadcast %175 : i32 to vector<1x64xi32>
    %204 = vector.broadcast %c4_i32_45 : i32 to vector<1x64xi32>
    %205 = arith.select %32, %203, %204 : vector<1x64xi1>, vector<1x64xi32>
    %206 = vector.broadcast %7 : vector<8x1xi32> to vector<8x64xi32>
    %207 = vector.broadcast %205 : vector<1x64xi32> to vector<8x64xi32>
    %208 = arith.cmpi sgt, %206, %207 : vector<8x64xi32>
    %209 = arith.select %208, %202, %174 : vector<8x64xi1>, vector<8x64xf32>
    %c5_i32 = arith.constant 5 : i32
    %c7_i32_53 = arith.constant 7 : i32
    %210 = arith.subi %c7_i32_53, %c5_i32 : i32
    %c8_i32_54 = arith.constant 8 : i32
    %211 = arith.muli %c5_i32, %c8_i32_54 : i32
    %212 = tpu.assume_multiple %211, 8 : i32
    %213 = arith.index_cast %212 : i32 to index
    %c0_55 = arith.constant 0 : index
    %214 = vector.load %arg8[%213, %c0_55] : memref<64x256xf32, #tpu.memory_space<vmem>>, vector<8x256xf32>
    %215 = arith.truncf %209 : vector<8x64xf32> to vector<8x64xbf16>
    %cst_56 = arith.constant dense<0.000000e+00> : vector<8x256xf32>
    %216 = tpu.matmul %215, %8, %cst_56 {dimension_numbers = #tpu.dot_dimension_numbers<[1], [0], [0], [1], [0, 0, 1, 1], [], []>} : vector<8x64xbf16>, vector<64x256xbf16>, vector<8x256xf32> -> vector<8x256xf32>
    %217 = vector.extract_strided_slice %214 {offsets = [0, 0], sizes = [8, 128], strides = [1, 1]} : vector<8x256xf32> to vector<8x128xf32>
    %218 = vector.extract_strided_slice %216 {offsets = [0, 0], sizes = [8, 128], strides = [1, 1]} : vector<8x256xf32> to vector<8x128xf32>
    %219 = arith.addf %217, %218 : vector<8x128xf32>
    %cst_57 = arith.constant 5.000000e-01 : f32
    %220 = vector.broadcast %cst_57 : f32 to vector<8x128xf32>
    %221 = arith.mulf %220, %219 : vector<8x128xf32>
    %222 = math.tanh %221 : vector<8x128xf32>
    %cst_58 = arith.constant 5.000000e-01 : f32
    %223 = vector.broadcast %cst_58 : f32 to vector<8x128xf32>
    %224 = arith.mulf %223, %222 : vector<8x128xf32>
    %cst_59 = arith.constant 5.000000e-01 : f32
    %225 = vector.broadcast %cst_59 : f32 to vector<8x128xf32>
    %226 = arith.addf %224, %225 : vector<8x128xf32>
    %227 = vector.extract_strided_slice %226 {offsets = [0, 0], sizes = [8, 64], strides = [1, 1]} : vector<8x128xf32> to vector<8x64xf32>
    %228 = vector.extract_strided_slice %226 {offsets = [0, 64], sizes = [8, 64], strides = [1, 1]} : vector<8x128xf32> to vector<8x64xf32>
    %229 = vector.extract_strided_slice %214 {offsets = [0, 128], sizes = [8, 64], strides = [1, 1]} : vector<8x256xf32> to vector<8x64xf32>
    %230 = vector.extract_strided_slice %216 {offsets = [0, 128], sizes = [8, 64], strides = [1, 1]} : vector<8x256xf32> to vector<8x64xf32>
    %231 = arith.addf %230, %11 : vector<8x64xf32>
    %232 = arith.mulf %227, %231 : vector<8x64xf32>
    %233 = arith.addf %229, %232 : vector<8x64xf32>
    %234 = math.tanh %233 : vector<8x64xf32>
    %235 = arith.subf %209, %234 : vector<8x64xf32>
    %236 = arith.mulf %228, %235 : vector<8x64xf32>
    %237 = arith.addf %234, %236 : vector<8x64xf32>
    %238 = vector.broadcast %210 : i32 to vector<1x64xi32>
    %239 = vector.broadcast %c5_i32 : i32 to vector<1x64xi32>
    %240 = arith.select %32, %238, %239 : vector<1x64xi1>, vector<1x64xi32>
    %241 = vector.broadcast %7 : vector<8x1xi32> to vector<8x64xi32>
    %242 = vector.broadcast %240 : vector<1x64xi32> to vector<8x64xi32>
    %243 = arith.cmpi sgt, %241, %242 : vector<8x64xi32>
    %244 = arith.select %243, %237, %209 : vector<8x64xi1>, vector<8x64xf32>
    %c6_i32 = arith.constant 6 : i32
    %c7_i32_60 = arith.constant 7 : i32
    %245 = arith.subi %c7_i32_60, %c6_i32 : i32
    %c8_i32_61 = arith.constant 8 : i32
    %246 = arith.muli %c6_i32, %c8_i32_61 : i32
    %247 = tpu.assume_multiple %246, 8 : i32
    %248 = arith.index_cast %247 : i32 to index
    %c0_62 = arith.constant 0 : index
    %249 = vector.load %arg8[%248, %c0_62] : memref<64x256xf32, #tpu.memory_space<vmem>>, vector<8x256xf32>
    %250 = arith.truncf %244 : vector<8x64xf32> to vector<8x64xbf16>
    %cst_63 = arith.constant dense<0.000000e+00> : vector<8x256xf32>
    %251 = tpu.matmul %250, %8, %cst_63 {dimension_numbers = #tpu.dot_dimension_numbers<[1], [0], [0], [1], [0, 0, 1, 1], [], []>} : vector<8x64xbf16>, vector<64x256xbf16>, vector<8x256xf32> -> vector<8x256xf32>
    %252 = vector.extract_strided_slice %249 {offsets = [0, 0], sizes = [8, 128], strides = [1, 1]} : vector<8x256xf32> to vector<8x128xf32>
    %253 = vector.extract_strided_slice %251 {offsets = [0, 0], sizes = [8, 128], strides = [1, 1]} : vector<8x256xf32> to vector<8x128xf32>
    %254 = arith.addf %252, %253 : vector<8x128xf32>
    %cst_64 = arith.constant 5.000000e-01 : f32
    %255 = vector.broadcast %cst_64 : f32 to vector<8x128xf32>
    %256 = arith.mulf %255, %254 : vector<8x128xf32>
    %257 = math.tanh %256 : vector<8x128xf32>
    %cst_65 = arith.constant 5.000000e-01 : f32
    %258 = vector.broadcast %cst_65 : f32 to vector<8x128xf32>
    %259 = arith.mulf %258, %257 : vector<8x128xf32>
    %cst_66 = arith.constant 5.000000e-01 : f32
    %260 = vector.broadcast %cst_66 : f32 to vector<8x128xf32>
    %261 = arith.addf %259, %260 : vector<8x128xf32>
    %262 = vector.extract_strided_slice %261 {offsets = [0, 0], sizes = [8, 64], strides = [1, 1]} : vector<8x128xf32> to vector<8x64xf32>
    %263 = vector.extract_strided_slice %261 {offsets = [0, 64], sizes = [8, 64], strides = [1, 1]} : vector<8x128xf32> to vector<8x64xf32>
    %264 = vector.extract_strided_slice %249 {offsets = [0, 128], sizes = [8, 64], strides = [1, 1]} : vector<8x256xf32> to vector<8x64xf32>
    %265 = vector.extract_strided_slice %251 {offsets = [0, 128], sizes = [8, 64], strides = [1, 1]} : vector<8x256xf32> to vector<8x64xf32>
    %266 = arith.addf %265, %11 : vector<8x64xf32>
    %267 = arith.mulf %262, %266 : vector<8x64xf32>
    %268 = arith.addf %264, %267 : vector<8x64xf32>
    %269 = math.tanh %268 : vector<8x64xf32>
    %270 = arith.subf %244, %269 : vector<8x64xf32>
    %271 = arith.mulf %263, %270 : vector<8x64xf32>
    %272 = arith.addf %269, %271 : vector<8x64xf32>
    %273 = vector.broadcast %245 : i32 to vector<1x64xi32>
    %274 = vector.broadcast %c6_i32 : i32 to vector<1x64xi32>
    %275 = arith.select %32, %273, %274 : vector<1x64xi1>, vector<1x64xi32>
    %276 = vector.broadcast %7 : vector<8x1xi32> to vector<8x64xi32>
    %277 = vector.broadcast %275 : vector<1x64xi32> to vector<8x64xi32>
    %278 = arith.cmpi sgt, %276, %277 : vector<8x64xi32>
    %279 = arith.select %278, %272, %244 : vector<8x64xi1>, vector<8x64xf32>
    %c7_i32_67 = arith.constant 7 : i32
    %c7_i32_68 = arith.constant 7 : i32
    %280 = arith.subi %c7_i32_68, %c7_i32_67 : i32
    %c8_i32_69 = arith.constant 8 : i32
    %281 = arith.muli %c7_i32_67, %c8_i32_69 : i32
    %282 = tpu.assume_multiple %281, 8 : i32
    %283 = arith.index_cast %282 : i32 to index
    %c0_70 = arith.constant 0 : index
    %284 = vector.load %arg8[%283, %c0_70] : memref<64x256xf32, #tpu.memory_space<vmem>>, vector<8x256xf32>
    %285 = arith.truncf %279 : vector<8x64xf32> to vector<8x64xbf16>
    %cst_71 = arith.constant dense<0.000000e+00> : vector<8x256xf32>
    %286 = tpu.matmul %285, %8, %cst_71 {dimension_numbers = #tpu.dot_dimension_numbers<[1], [0], [0], [1], [0, 0, 1, 1], [], []>} : vector<8x64xbf16>, vector<64x256xbf16>, vector<8x256xf32> -> vector<8x256xf32>
    %287 = vector.extract_strided_slice %284 {offsets = [0, 0], sizes = [8, 128], strides = [1, 1]} : vector<8x256xf32> to vector<8x128xf32>
    %288 = vector.extract_strided_slice %286 {offsets = [0, 0], sizes = [8, 128], strides = [1, 1]} : vector<8x256xf32> to vector<8x128xf32>
    %289 = arith.addf %287, %288 : vector<8x128xf32>
    %cst_72 = arith.constant 5.000000e-01 : f32
    %290 = vector.broadcast %cst_72 : f32 to vector<8x128xf32>
    %291 = arith.mulf %290, %289 : vector<8x128xf32>
    %292 = math.tanh %291 : vector<8x128xf32>
    %cst_73 = arith.constant 5.000000e-01 : f32
    %293 = vector.broadcast %cst_73 : f32 to vector<8x128xf32>
    %294 = arith.mulf %293, %292 : vector<8x128xf32>
    %cst_74 = arith.constant 5.000000e-01 : f32
    %295 = vector.broadcast %cst_74 : f32 to vector<8x128xf32>
    %296 = arith.addf %294, %295 : vector<8x128xf32>
    %297 = vector.extract_strided_slice %296 {offsets = [0, 0], sizes = [8, 64], strides = [1, 1]} : vector<8x128xf32> to vector<8x64xf32>
    %298 = vector.extract_strided_slice %296 {offsets = [0, 64], sizes = [8, 64], strides = [1, 1]} : vector<8x128xf32> to vector<8x64xf32>
    %299 = vector.extract_strided_slice %284 {offsets = [0, 128], sizes = [8, 64], strides = [1, 1]} : vector<8x256xf32> to vector<8x64xf32>
    %300 = vector.extract_strided_slice %286 {offsets = [0, 128], sizes = [8, 64], strides = [1, 1]} : vector<8x256xf32> to vector<8x64xf32>
    %301 = arith.addf %300, %11 : vector<8x64xf32>
    %302 = arith.mulf %297, %301 : vector<8x64xf32>
    %303 = arith.addf %299, %302 : vector<8x64xf32>
    %304 = math.tanh %303 : vector<8x64xf32>
    %305 = arith.subf %279, %304 : vector<8x64xf32>
    %306 = arith.mulf %298, %305 : vector<8x64xf32>
    %307 = arith.addf %304, %306 : vector<8x64xf32>
    %308 = vector.broadcast %280 : i32 to vector<1x64xi32>
    %309 = vector.broadcast %c7_i32_67 : i32 to vector<1x64xi32>
    %310 = arith.select %32, %308, %309 : vector<1x64xi1>, vector<1x64xi32>
    %311 = vector.broadcast %7 : vector<8x1xi32> to vector<8x64xi32>
    %312 = vector.broadcast %310 : vector<1x64xi32> to vector<8x64xi32>
    %313 = arith.cmpi sgt, %311, %312 : vector<8x64xi32>
    %314 = arith.select %313, %307, %279 : vector<8x64xi1>, vector<8x64xf32>
    %c8_i32_75 = arith.constant 8 : i32
    %315 = vector.extract_strided_slice %314 {offsets = [0, 0], sizes = [8, 32], strides = [1, 1]} : vector<8x64xf32> to vector<8x32xf32>
    %316 = vector.extract_strided_slice %314 {offsets = [0, 32], sizes = [8, 32], strides = [1, 1]} : vector<8x64xf32> to vector<8x32xf32>
    %317 = arith.addf %315, %316 : vector<8x32xf32>
    %c0_76 = arith.constant 0 : index
    %c0_77 = arith.constant 0 : index
    %318 = vector.load %arg7[%c0_76, %c0_77] : memref<8x32xf32, #tpu.memory_space<vmem>>, vector<8x32xf32>
    tpu.vector_store %arg7[%c0_76, %c0_77], %317 {strides = array<i32>} : memref<8x32xf32, #tpu.memory_space<vmem>>, vector<8x32xf32>,
    return
  }
}

</mosaic_0001>

<bundles_post_ra>
// kernel: tpu_custom_call.1
= control target key start
LH: loop header
LB: loop body
LE: loop exit
PB: predicated region body
PF: predicated region fallthrough
CT: control target
= control target key end

     0   :  { %12 = vsyncpa [#allocation4], 0  ;;  %s1467_s0 = inlined_call_operand.vmem [shape: bf16[64,32], index: 0, kind: input, shape index: {}]   ;;  %s1468_s1 = inlined_call_operand.vmem [shape: s32[8,1], index: 1, kind: input, shape index: {}]   ;;  %s1469_s2 = inlined_call_operand.hbm [shape: f32[8,64], index: 2, kind: input, shape index: {}]   ;;  %s1470_s3 = inlined_call_operand.hbm [shape: bf16[32,256], index: 3, kind: input, shape index: {}]   ;;  %s1471_s4 = inlined_call_operand.vmem [shape: bf16[64,256], index: 4, kind: input, shape index: {}]   ;;  %s1472_s5 = inlined_call_operand.vmem [shape: f32[1,256], index: 5, kind: input, shape index: {}]   ;;  %s1473_s6 = inlined_call_operand.vmem [shape: f32[1,64], index: 6, kind: input, shape index: {}]   ;;  %s1474_s7 = inlined_call_operand.hbm [shape: f32[8,32], index: 7, kind: output, shape index: {}]  }
   0x1   :  { %13 = vsyncpa [#allocation7], 0 }
   0x2   :  { %14 = vsyncpa [#allocation5], 0  ;;  %s1140_s24 = smov [#allocation3]   ;;  %s1141_s26 = smov [#allocation6]  }
   0x3   :  { %s25_s25 = sshll.u32 %s1140_s24, 4  ;;  %s34_s27 = sshll.u32 %s1141_s26, 4  ;;  %s26_s25 = int_to_ptr.vmem [resolvable:$true] %s25_s25  ;;  %s35_s27 = int_to_ptr.vmem [resolvable:$true] %s34_s27 }
   0x4   :  { %s1074_s28 = scalar_lea.vmem %s26_s25, 128  ;;  %p1079_p1 = scmp.lt.s32.totalorder %s26_s25, %s26_s25 }
   0x5   :  { %p1075_p0 = scmp.ne.s32.totalorder %s26_s25, %s1074_s28  ;;  %p1080_p2 = scmp.lt.s32.totalorder %s1074_s28, %s1074_s28 }
   0x7   :  { %p1081_p3 = por %p1080_p2, %p1079_p1 }
   0x9   :  { %p1082_p4 = pnand %p1081_p3, %p1075_p0 }
   0xb   :  { %1085 = shalt.err (!%p1082_p4)
}
   0xc   :  { %28 = dma.hbm_to_vmem [thread:$0]  %s1469_s2, 128, %s26_s25, [#allocation4]  }
   0xd   :  { %s1094_s8 = scalar_lea.vmem %s35_s27, 512  ;;  %p1099_p6 = scmp.lt.s32.totalorder %s35_s27, %s35_s27 }
   0xe   :  { %p1095_p5 = scmp.ne.s32.totalorder %s35_s27, %s1094_s8  ;;  %p1100_p7 = scmp.lt.s32.totalorder %s1094_s8, %s1094_s8 }
  0x10   :  { %p1101_p8 = por %p1100_p7, %p1099_p6 }
  0x12   :  { %p1102_p9 = pnand %p1101_p8, %p1095_p5 }
  0x14   :  { %1105 = shalt.err (!%p1102_p9)
}
  0x15   :  { %s1142_s9 = smov 128   ;;  %s1143_s10 = smov 8  }
  0x16   :  { %40 = dma.hbm_to_vmem [thread:$0]  %s1470_s3, 512, %s35_s27, [#allocation7], %s1142_s9, %s1142_s9, %s1143_s10  }
  0x17   :  { %1130 = dma.done.wait [#allocation4], 128  }
  0x18   :  { %1131 = vsyncadd [#allocation4], 4294967168 }
  0x19   :  { %1132 = dma.done.wait [#allocation7], 512  }
  0x1a   :  { %1133 = vsyncadd [#allocation7], 4294966784  ;;  %v1144_v0 = vmov 0   ;;  %v1205_v1 = vld [vmem:[%s1468_s1] sm:$0xff]  ;;  %v1215_v3 = vld [vmem:[%s1471_s4 + $0x8] sm:$0xff]  ;;  %vm118_vm0 = vcmask 261120   ;;  %v68_v19 = vlaneseq }
  0x1b   :  { %163 = vmatprep.mubr.bf16.mxu0 %v1144_v0  ;;  %v1210_v2 = vld [vmem:[%s1471_s4] sm:$0xff]  ;;  %v1220_v4 = vld [vmem:[%s1471_s4 + $0x10] sm:$0xff]  ;;  %v1225_v5 = vld [vmem:[%s1471_s4 + $0x18] sm:$0xff] }
  0x1c   :  { %v1230_v6 = vld [vmem:[%s1471_s4 + $0x20] sm:$0xff]  ;;  %v1235_v7 = vld [vmem:[%s1471_s4 + $0x28] sm:$0xff]  ;;  %v1240_v8 = vld [vmem:[%s1471_s4 + $0x30] sm:$0xff]  ;;  %v1271_v20 = vand.u32 127, %v68_v19  ;;  %v69_v24 = vshrl.u32 %v68_v19, 7 }
  0x1d   :  { %v1245_v9 = vld [vmem:[%s1471_s4 + $0x38] sm:$0xff]  ;;  %v1250_v10 = vld [vmem:[%s1473_s6] ss:$0 sm:$0xff]  ;;  %v1026_v13 = vld [vmem:[#allocation6 + $0x4] ss:$8 sps:$4 sm:$0xff]  }
  0x1e   :  { %v1023_v11 = vld [vmem:[#allocation6 + $0x14] ss:$8 sps:$4 sm:$0xff]   ;;  %v1025_v12 = vld [vmem:[#allocation6 + $0x10] ss:$8 sps:$4 sm:$0xff]   ;;  %v1028_v14 = vld [vmem:[#allocation6] ss:$8 sps:$4 sm:$0xff]  }
  0x1f   :  { %143 = vmatprep.subr.bf16.mxu0 %v1023_v11  ;;  %v1029_v15 = vld [vmem:[%s1467_s0] sm:$0xff]   ;;  %v1030_v16 = vld [vmem:[%s1467_s0 + $0x8] sm:$0xff]   ;;  %v1031_v17 = vld [vmem:[%s1467_s0 + $0x10] sm:$0xff]   ;;  %v238_v21 = vadd.s32 128, %v1271_v20  ;;  %vm239_vm1 = vcmp.ge.s32.totalorder %v1271_v20, 32  ;;  %vm241_vm2 = vcmp.lt.s32.totalorder %v1271_v20, 64 }
  0x20   :  { %144 = vmatpush1.bf16.msra.mxu0 %v1025_v12  ;;  %v1032_v18 = vld [vmem:[%s1467_s0 + $0x18] sm:$0xff]   ;;  %vm245_vm3 = vcmp.ge.s32.totalorder %v1271_v20, 96  ;;  %vm243_vm4 = vmand %vm239_vm1, %vm241_vm2  ;;  %v70_v25 = vsub.s32 0, %v69_v24  ;;  %v66_v26 = vld [vmem:[%s1472_s5] sm:$0x3]  ;;  %v74_v27 = vsub.s32 1, %v69_v24 }
  0x21   :  { %145 = vmatprep.subr.bf16.mxu0 %v1026_v13  ;;  %vm1279_vm5 = vmor %vm243_vm4, %vm245_vm3  ;;  %vm254_vm6 = vcmp.ge.s32.totalorder %v238_v21, 160  ;;  %vm256_vm7 = vcmp.lt.s32.totalorder %v238_v21, 192  ;;  %s1136_s5 = smov 0  }
  0x22   :  { %vm1283_vm8 = vmand %vm254_vm6, %vm256_vm7  ;;  %v71_v28 = vrot.slane %v66_v26, %v70_v25  ;;  %v75_v29 = vrot.slane %v66_v26, %v74_v27 }
  0x24   :  { %146 = vmatpush1.bf16.msra.mxu0 %v1028_v14 }
  0x27   :  { %971 = vmatmul.mubr.msk.bf16.vlgmr.msra.gmra.mxu0 %vm118_vm0, %v1029_v15 }
  0x28   :  { %173 = vmatprep.mubr.bf16.mxu0 %v1144_v0 }
  0x2f   :  { %972 = vmatmul.mubr.msk.bf16.gmra.mxu0 %vm118_vm0, %v1030_v16 }
  0x30   :  { %183 = vmatprep.mubr.bf16.mxu0 %v1144_v0 }
  0x37   :  { %973 = vmatmul.mubr.msk.bf16.gmra.mxu0 %vm118_vm0, %v1031_v17 }
  0x38   :  { %193 = vmatprep.mubr.bf16.mxu0 %v1144_v0 }
  0x3f   :  { %974 = vmatmul.mubr.msk.bf16.gmra.mxu0 %vm118_vm0, %v1032_v18 }
  0xe7   :  { %v165_v30 = vpop.f32.mrf.mxu0 }
  0xe8   :  { %v166_v31 = vadd.f32 %v165_v30, %v71_v28 }
  0xe9   :  { %v167_v32 = vpop.f32.mrf.mxu0 }
  0xea   :  { %204 = vst [vmem:[#allocation2] sm:$0xff] %v166_v31  ;;  %v168_v33 = vadd.f32 %v167_v32, %v75_v29 }
  0xeb   :  { %v169_v34 = vpop.f32.mrf.mxu0 }
  0xec   :  { %205 = vst [vmem:[#allocation2 + $0x8] sm:$0xff] %v168_v33  ;;  %v170_v35 = vadd.f32 %v169_v34, %v71_v28 }
  0xed   :  { %v171_v36 = vpop.f32.mrf.mxu0 }
  0xee   :  { %206 = vst [vmem:[#allocation2 + $0x10] sm:$0xff] %v170_v35  ;;  %v172_v37 = vadd.f32 %v171_v36, %v75_v29 }
  0xef   :  { %v175_v38 = vpop.f32.mrf.mxu0 }
  0xf0   :  { %207 = vst [vmem:[#allocation2 + $0x18] sm:$0xff] %v172_v37  ;;  %v176_v39 = vadd.f32 %v175_v38, %v71_v28 }
  0xf1   :  { %v177_v40 = vpop.f32.mrf.mxu0 }
  0xf2   :  { %208 = vst [vmem:[#allocation2 + $0x20] sm:$0xff] %v176_v39  ;;  %v178_v41 = vadd.f32 %v177_v40, %v75_v29 }
  0xf3   :  { %v179_v42 = vpop.f32.mrf.mxu0 }
  0xf4   :  { %209 = vst [vmem:[#allocation2 + $0x28] sm:$0xff] %v178_v41  ;;  %v180_v43 = vadd.f32 %v179_v42, %v71_v28 }
  0xf5   :  { %v181_v44 = vpop.f32.mrf.mxu0 }
  0xf6   :  { %210 = vst [vmem:[#allocation2 + $0x30] sm:$0xff] %v180_v43  ;;  %v182_v45 = vadd.f32 %v181_v44, %v75_v29 }
  0xf7   :  { %v185_v46 = vpop.f32.mrf.mxu0 }
  0xf8   :  { %211 = vst [vmem:[#allocation2 + $0x38] sm:$0xff] %v182_v45  ;;  %v186_v47 = vadd.f32 %v185_v46, %v71_v28 }
  0xf9   :  { %v187_v48 = vpop.f32.mrf.mxu0 }
  0xfa   :  { %212 = vst [vmem:[#allocation2 + $0x40] sm:$0xff] %v186_v47  ;;  %v188_v49 = vadd.f32 %v187_v48, %v75_v29 }
  0xfb   :  { %v189_v50 = vpop.f32.mrf.mxu0 }
  0xfc   :  { %213 = vst [vmem:[#allocation2 + $0x48] sm:$0xff] %v188_v49  ;;  %v190_v51 = vadd.f32 %v189_v50, %v71_v28 }
  0xfd   :  { %v191_v52 = vpop.f32.mrf.mxu0 }
  0xfe   :  { %214 = vst [vmem:[#allocation2 + $0x50] sm:$0xff] %v190_v51  ;;  %v192_v53 = vadd.f32 %v191_v52, %v75_v29 }
  0xff   :  { %v195_v54 = vpop.f32.mrf.mxu0 }
 0x100   :  { %215 = vst [vmem:[#allocation2 + $0x58] sm:$0xff] %v192_v53  ;;  %v196_v55 = vadd.f32 %v195_v54, %v71_v28 }
 0x101   :  { %v197_v56 = vpop.f32.mrf.mxu0 }
 0x102   :  { %216 = vst [vmem:[#allocation2 + $0x60] sm:$0xff] %v196_v55  ;;  %v198_v57 = vadd.f32 %v197_v56, %v75_v29 }
 0x103   :  { %v199_v58 = vpop.f32.mrf.mxu0 }
 0x104   :  { %217 = vst [vmem:[#allocation2 + $0x68] sm:$0xff] %v198_v57  ;;  %v200_v59 = vadd.f32 %v199_v58, %v71_v28 }
 0x105   :  { %v201_v60 = vpop.f32.mrf.mxu0 }
 0x106   :  { %218 = vst [vmem:[#allocation2 + $0x70] sm:$0xff] %v200_v59  ;;  %v202_v61 = vadd.f32 %v201_v60, %v75_v29 }
 0x108   :  { %219 = vst [vmem:[#allocation2 + $0x78] sm:$0xff] %v202_v61 }
 0x109 LB: > { %s267_s13 = ssub.s32 7, %s1138_s5  ;;  %s976_s14 = sshll.u32 %s1138_s5, 3  ;;  %s1138_s5 = sphi %s1136_s5, %s266_s5  }
 0x10a   : > { %s977_s15 = sshll.u32 %s267_s13, 3  ;;  %s270_s16 = sshra.s32 %s976_s14, 3 }
 0x10b   : > { %s998_s17 = sshll.u32 %s270_s16, 4  ;;  %s277_s3 = sshra.s32 %s977_s15, 3 }
 0x10c   : > { %s999_s18 = sshll.u32 %s277_s3, 4  ;;  %s274_s19 = scalar_lea.vmem [#allocation2], %s998_s17 }
 0x10d   : > { %s281_s20 = scalar_lea.vmem [#allocation2], %s999_s18  ;;  %s266_s5 = sadd.s32 1, %s1138_s5  }
 0x10e   : > { %p263_p10 = scmp.ge.s32.totalorder %s266_s5, 4  }
 0x10f   : > { %v275_v62 = vld [vmem:[%s274_s19] sm:$0xff]  ;;  %v276_v63 = vld [vmem:[%s274_s19 + $0x8] sm:$0xff]  ;;  %v1300_v17 = vcombine.high (%p263_p10), %v1240_v8, %v1245_v9  ;;  %v1304_v18 = vcombine.low (%p263_p10), %v1240_v8, %v1245_v9  ;;  %v1308_v19 = vcombine.high (%p263_p10), %v1230_v6, %v1235_v7  ;;  %379 = vmatprep.mubr.bf16.mxu1 (%p263_p10), %v1144_v0  ;;  %1033 = vset.pattern.permute.xlu0 (%p263_p10), %v1144_v0  ;;  %vm343_vm9 = vcmask (%p263_p10), 523264   ;;  %s1145_s1 = smov (%p263_p10), 64   ;;  %s1153_s21 = smov (%p263_p10), 96  }
 0x110   : > { %v282_v11 = vld [vmem:[%s281_s20] sm:$0xff]  ;;  %v283_v12 = vld [vmem:[%s281_s20 + $0x8] sm:$0xff]  ;;  %265 = sbr.rel (!%p263_p10) target bundleno = 265 (0x109), region = 73  ;;  %v1317_v21 = vcombine.low (%p263_p10), %v1230_v6, %v1235_v7  ;;  %v1323_v8 = vcombine.high (%p263_p10), %v1220_v4, %v1225_v5  ;;  %528 = vmatprep.mubr.bf16.mxu0 (%p263_p10), %v1144_v0  ;;  %v1330_v9 = vcombine.low (%p263_p10), %v1220_v4, %v1225_v5  ;;  %v1336_v6 = vcombine.high (%p263_p10), %v1210_v2, %v1215_v3  ;;  %s1154_s22 = smov (%p263_p10), [#allocation8]  }
 0x111   : > { %v288_v13 = vsel %vm1279_vm5, %v282_v11, %v275_v62  ;;  %v289_v14 = vsel %vm1283_vm8, %v283_v12, %v276_v63  ;;  %v292_v15 = vsel %vm1279_vm5, %v275_v62, %v282_v11  ;;  %v293_v16 = vsel %vm1283_vm8, %v276_v63, %v283_v12  ;;  %355 = vmatprep.subr.bf16.mxu1 (%p263_p10), %v1300_v17  ;;  %v296_v22 = vld [vmem:[#allocation3] sm:$0xff] (%p263_p10)  ;;  %s937_s23 = sshll.u32 (%p263_p10), %s1154_s22, 4  ;;  %s938_s23 = int_to_ptr.vmem [resolvable:$true] %s937_s23 }
 0x112   : > { %290 = vst [vmem:[%s274_s19] sm:$0xff] %v288_v13  ;;  %291 = vst [vmem:[%s274_s19 + $0x8] sm:$0xff] %v289_v14  ;;  %504 = vmatprep.subr.bf16.mxu0 (%p263_p10), %v1300_v17  ;;  %356 = vmatpush1.bf16.msra.mxu1 (%p263_p10), %v1304_v18  ;;  %v1342_v7 = vcombine.low (%p263_p10), %v1210_v2, %v1215_v3  ;;  %v302_v4 = vpack.c.bf16 (%p263_p10), %v296_v22, %v296_v22  ;;  %v408_v39 = vsel (%p263_p10), %vm239_vm1, 7, %v1144_v0  ;;  %v1146_v61 = vmov (%p263_p10), 1   ;;  %s1106_s24 = scalar_lea.vmem (%p263_p10), %s938_s23, 128  ;;  %p1111_p12 = scmp.lt.s32.totalorder (%p263_p10), %s938_s23, %s938_s23 }
 0x113   : > { %294 = vst [vmem:[%s281_s20] sm:$0xff] %v292_v15  ;;  %295 = vst [vmem:[%s281_s20 + $0x8] sm:$0xff] %v293_v16  ;;  %505 = vmatpush1.bf16.msra.mxu0 (%p263_p10), %v1304_v18  ;;  %357 = vmatprep.subr.bf16.mxu1 (%p263_p10), %v1308_v19  ;;  %v484_v62 = vsel (%p263_p10), %vm239_vm1, 6, %v1146_v61  ;;  %p1107_p11 = scmp.ne.s32.totalorder (%p263_p10), %s938_s23, %s1106_s24  ;;  %p1112_p13 = scmp.lt.s32.totalorder (%p263_p10), %s1106_s24, %s1106_s24 }
 0x114   :  { %506 = vmatprep.subr.bf16.mxu0 (%p263_p10), %v1308_v19 }
 0x115   :  { %p1113_p0 = por %p1112_p13, %p1111_p12 }
 0x116   :  { %358 = vmatpush1.bf16.msra.mxu1 %v1317_v21 }
 0x117   :  { %507 = vmatpush1.bf16.msra.mxu0 %v1317_v21  ;;  %359 = vmatprep.subr.bf16.mxu1 %v1323_v8  ;;  %p1114_p1 = pnand %p1113_p0, %p1107_p11 }
 0x118   :  { %508 = vmatprep.subr.bf16.mxu0 %v1323_v8 }
 0x11a   :  { %360 = vmatpush1.bf16.msra.mxu1 %v1330_v9  ;;  %v300_v2 = vld [vmem:[#allocation2] sm:$0xff]  ;;  %v301_v31 = vld [vmem:[#allocation2 + $0x8] sm:$0xff]  ;;  %v418_v54 = vld [vmem:[#allocation2 + $0x18] sm:$0xff] }
 0x11b   :  { %509 = vmatpush1.bf16.msra.mxu0 %v1330_v9  ;;  %361 = vmatprep.subr.bf16.mxu1 %v1336_v6  ;;  %v490_v14 = vld [vmem:[#allocation2 + $0x20] sm:$0xff] }
 0x11c   :  { %510 = vmatprep.subr.bf16.mxu0 %v1336_v6 }
 0x11e   :  { %362 = vmatpush1.bf16.msra.mxu1 %v1342_v7 }
 0x11f   :  { %511 = vmatpush1.bf16.msra.mxu0 %v1342_v7  ;;  %431 = vmatprep.subr.bf16.mxu1 %v1300_v17 }
 0x120   :  { %650 = vmatprep.subr.bf16.mxu0 %v1300_v17 }
 0x121   :  { %990 = vmatmul.mubr.msk.bf16.vlgmr.msra.gmra.mxu1 %vm343_vm9, %v302_v4 }
 0x122   :  { %432 = vmatpush1.bf16.msra.mxu1 %v1304_v18  ;;  %455 = vmatprep.mubr.bf16.mxu1 %v1144_v0 }
 0x123   :  { %433 = vmatprep.subr.bf16.mxu1 %v1308_v19 }
 0x126   :  { %434 = vmatpush1.bf16.msra.mxu1 %v1317_v21 }
 0x127   :  { %435 = vmatprep.subr.bf16.mxu1 %v1323_v8 }
 0x12a   :  { %436 = vmatpush1.bf16.msra.mxu1 %v1330_v9 }
 0x12b   :  { %437 = vmatprep.subr.bf16.mxu1 %v1336_v6 }
 0x12e   :  { %438 = vmatpush1.bf16.msra.mxu1 %v1342_v7 }
 0x12f   :  { %577 = vmatprep.subr.bf16.mxu1 %v1300_v17 }
 0x1e1   :  { %v381_v3 = vpop.f32.mrf.mxu1 }
 0x1e2   :  { %v388_v5 = vadd.f32 %v381_v3, %v300_v2 }
 0x1e3   :  { %v383_v23 = vpop.f32.mrf.mxu1 }
 0x1e4   :  { %v389_v24 = vmul.f32 0.5, %v388_v5  ;;  %v393_v30 = vadd.f32 %v1250_v10, %v383_v23 }
 0x1e5   :  { %v385_v25 = vpop.f32.mrf.mxu1 }
 0x1e6   :  { %1034 = vtanh.f32 %v389_v24 }
 0x1e7   :  { %v386_v26 = vpop.f32.mrf.mxu1 }
 0x1e8   :  { %v491_v26 = vld [vmem:[#allocation2 + $0x28] sm:$0xff] }
 0x1f3   :  { %v1035_v27 = vpop.eup %1034 }
 0x1f4   :  { %v391_v28 = vmul.f32 0.5, %v1035_v27 }
 0x1f6   :  { %v392_v29 = vadd.f32 0.5, %v391_v28 }
 0x1f8   :  { %v394_v32 = vmul.f32 %v393_v30, %v392_v29 }
 0x1fa   :  { %v395_v33 = vadd.f32 %v394_v32, %v301_v31 }
 0x1fc   :  { %1036 = vtanh.f32 %v395_v33  ;;  %v1147_v33 = vmov 2  }
 0x209   :  { %v1037_v34 = vpop.eup %1036 }
 0x20a   :  { %v397_v35 = vsub.f32 %v296_v22, %v1037_v34 }
 0x20c   :  { %399 = vrot.lane.b32.xlu0 %v397_v35, %s1145_s1 }
 0x210   :  { %410 = vperm.xlu0 %1033, %v1205_v1   ;;  %v417_v1 = vld [vmem:[#allocation2 + $0x10] sm:$0xff] }
 0x27e   :  { %v400_v36 = vpop.permute.xlu0 %399 }
 0x27f   :  { %v402_v37 = vmul.f32 %v400_v36, %v392_v29 }
 0x281   :  { %404 = vrot.lane.b32.xlu1 %v402_v37, %s1145_s1 }
 0x28b   :  { %v1365_v38 = vpop.permute.xlu0 %410 }
 0x28c   :  { %vm412_vm10 = vcmp.gt.s32.totalorder %v1365_v38, %v408_v39  ;;  %vm485_vm11 = vcmp.gt.s32.totalorder %v1365_v38, %v484_v62  ;;  %v636_v62 = vld [vmem:[#allocation2 + $0x40] sm:$0xff] }
 0x2f3   :  { %v405_v40 = vpop.permute.xlu1 %404 }
 0x2f4   :  { %v407_v41 = vadd.f32 %v1037_v34, %v405_v40  ;;  %v557_v34 = vsel %vm239_vm1, 5, %v1147_v33  ;;  %v563_v40 = vld [vmem:[#allocation2 + $0x30] sm:$0xff] }
 0x2f5   :  { %vm558_vm12 = vcmp.gt.s32.totalorder %v1365_v38, %v557_v34  ;;  %v709_v34 = vld [vmem:[#allocation2 + $0x50] sm:$0xff] }
 0x2f6   :  { %v413_v42 = vsel %vm412_vm10, %v407_v41, %v296_v22 }
 0x2f7   :  { %v419_v43 = vpack.c.bf16 %v413_v42, %v413_v42 }
 0x2f9   :  { %991 = vmatmul.mubr.msk.bf16.vlgmr.msra.gmra.mxu1 %vm343_vm9, %v419_v43 }
 0x2fa   :  { %578 = vmatpush1.bf16.msra.mxu1 %v1304_v18  ;;  %601 = vmatprep.mubr.bf16.mxu1 %v1144_v0 }
 0x2fb   :  { %579 = vmatprep.subr.bf16.mxu1 %v1308_v19 }
 0x2fe   :  { %580 = vmatpush1.bf16.msra.mxu1 %v1317_v21 }
 0x2ff   :  { %581 = vmatprep.subr.bf16.mxu1 %v1323_v8 }
 0x302   :  { %582 = vmatpush1.bf16.msra.mxu1 %v1330_v9 }
 0x303   :  { %583 = vmatprep.subr.bf16.mxu1 %v1336_v6 }
 0x306   :  { %584 = vmatpush1.bf16.msra.mxu1 %v1342_v7 }
 0x307   :  { %723 = vmatprep.subr.bf16.mxu1 %v1300_v17 }
 0x3b9   :  { %v457_v44 = vpop.f32.mrf.mxu1 }
 0x3ba   :  { %v464_v45 = vadd.f32 %v457_v44, %v417_v1 }
 0x3bb   :  { %v459_v46 = vpop.f32.mrf.mxu1 }
 0x3bc   :  { %v465_v47 = vmul.f32 0.5, %v464_v45  ;;  %v469_v53 = vadd.f32 %v1250_v10, %v459_v46 }
 0x3bd   :  { %v461_v48 = vpop.f32.mrf.mxu1 }
 0x3be   :  { %1038 = vtanh.f32 %v465_v47 }
 0x3bf   :  { %v462_v49 = vpop.f32.mrf.mxu1 }
 0x3cb   :  { %v1039_v50 = vpop.eup %1038 }
 0x3cc   :  { %v467_v51 = vmul.f32 0.5, %v1039_v50  ;;  %v564_v50 = vld [vmem:[#allocation2 + $0x38] sm:$0xff] }
 0x3ce   :  { %v468_v52 = vadd.f32 0.5, %v467_v51 }
 0x3d0   :  { %v470_v55 = vmul.f32 %v469_v53, %v468_v52 }
 0x3d2   :  { %v471_v56 = vadd.f32 %v470_v55, %v418_v54 }
 0x3d4   :  { %1040 = vtanh.f32 %v471_v56  ;;  %v1148_v56 = vmov 3  }
 0x3e1   :  { %v1041_v57 = vpop.eup %1040 }
 0x3e2   :  { %v473_v58 = vsub.f32 %v413_v42, %v1041_v57 }
 0x3e4   :  { %475 = vrot.lane.b32.xlu1 %v473_v58, %s1145_s1 }
 0x456   :  { %v476_v59 = vpop.permute.xlu1 %475 }
 0x457   :  { %v478_v60 = vmul.f32 %v476_v59, %v468_v52 }
 0x459   :  { %480 = vrot.lane.b32.xlu1 %v478_v60, %s1145_s1 }
 0x4cb   :  { %v481_v63 = vpop.permute.xlu1 %480 }
 0x4cc   :  { %v483_v11 = vadd.f32 %v1041_v57, %v481_v63  ;;  %v630_v57 = vsel %vm239_vm1, 4, %v1148_v56 }
 0x4cd   :  { %vm631_vm13 = vcmp.gt.s32.totalorder %v1365_v38, %v630_v57 }
 0x4ce   :  { %v486_v12 = vsel %vm485_vm11, %v483_v11, %v413_v42 }
 0x4cf   :  { %v492_v13 = vpack.c.bf16 %v486_v12, %v486_v12 }
 0x4d1   :  { %992 = vmatmul.mubr.msk.bf16.vlgmr.msra.gmra.mxu0 %vm343_vm9, %v492_v13 }
 0x4d2   :  { %651 = vmatpush1.bf16.msra.mxu0 %v1304_v18  ;;  %674 = vmatprep.mubr.bf16.mxu0 %v1144_v0 }
 0x4d3   :  { %652 = vmatprep.subr.bf16.mxu0 %v1308_v19 }
 0x4d6   :  { %653 = vmatpush1.bf16.msra.mxu0 %v1317_v21 }
 0x4d7   :  { %654 = vmatprep.subr.bf16.mxu0 %v1323_v8 }
 0x4da   :  { %655 = vmatpush1.bf16.msra.mxu0 %v1330_v9 }
 0x4db   :  { %656 = vmatprep.subr.bf16.mxu0 %v1336_v6 }
 0x4de   :  { %657 = vmatpush1.bf16.msra.mxu0 %v1342_v7 }
 0x4df   :  { %796 = vmatprep.subr.bf16.mxu0 %v1300_v17 }
 0x591   :  { %v530_v15 = vpop.f32.mrf.mxu0 }
 0x592   :  { %v537_v16 = vadd.f32 %v530_v15, %v490_v14 }
 0x593   :  { %v532_v22 = vpop.f32.mrf.mxu0 }
 0x594   :  { %v538_v4 = vmul.f32 0.5, %v537_v16  ;;  %v542_v25 = vadd.f32 %v1250_v10, %v532_v22 }
 0x595   :  { %v534_v2 = vpop.f32.mrf.mxu0 }
 0x596   :  { %1042 = vtanh.f32 %v538_v4 }
 0x597   :  { %v535_v3 = vpop.f32.mrf.mxu0 }
 0x598   :  { %v637_v3 = vld [vmem:[#allocation2 + $0x48] sm:$0xff] }
 0x5a3   :  { %v1043_v5 = vpop.eup %1042 }
 0x5a4   :  { %v540_v23 = vmul.f32 0.5, %v1043_v5 }
 0x5a6   :  { %v541_v24 = vadd.f32 0.5, %v540_v23 }
 0x5a8   :  { %v543_v27 = vmul.f32 %v542_v25, %v541_v24 }
 0x5aa   :  { %v544_v28 = vadd.f32 %v543_v27, %v491_v26 }
 0x5ac   :  { %1044 = vtanh.f32 %v544_v28  ;;  %v1149_v28 = vmov 4  }
 0x5b9   :  { %v1045_v29 = vpop.eup %1044 }
 0x5ba   :  { %v546_v30 = vsub.f32 %v486_v12, %v1045_v29 }
 0x5bc   :  { %548 = vrot.lane.b32.xlu0 %v546_v30, %s1145_s1 }
 0x62e   :  { %v549_v31 = vpop.permute.xlu0 %548 }
 0x62f   :  { %v551_v32 = vmul.f32 %v549_v31, %v541_v24 }
 0x631   :  { %553 = vrot.lane.b32.xlu1 %v551_v32, %s1145_s1 }
 0x6a3   :  { %v554_v35 = vpop.permute.xlu1 %553 }
 0x6a4   :  { %v556_v36 = vadd.f32 %v1045_v29, %v554_v35  ;;  %v703_v29 = vsel %vm239_vm1, 3, %v1149_v28 }
 0x6a5   :  { %vm704_vm14 = vcmp.gt.s32.totalorder %v1365_v38, %v703_v29 }
 0x6a6   :  { %v559_v37 = vsel %vm558_vm12, %v556_v36, %v486_v12 }
 0x6a7   :  { %v565_v39 = vpack.c.bf16 %v559_v37, %v559_v37 }
 0x6a9   :  { %993 = vmatmul.mubr.msk.bf16.vlgmr.msra.gmra.mxu1 %vm343_vm9, %v565_v39 }
 0x6aa   :  { %724 = vmatpush1.bf16.msra.mxu1 %v1304_v18  ;;  %747 = vmatprep.mubr.bf16.mxu1 %v1144_v0 }
 0x6ab   :  { %725 = vmatprep.subr.bf16.mxu1 %v1308_v19 }
 0x6ae   :  { %726 = vmatpush1.bf16.msra.mxu1 %v1317_v21 }
 0x6af   :  { %727 = vmatprep.subr.bf16.mxu1 %v1323_v8 }
 0x6b2   :  { %728 = vmatpush1.bf16.msra.mxu1 %v1330_v9 }
 0x6b3   :  { %729 = vmatprep.subr.bf16.mxu1 %v1336_v6 }
 0x6b6   :  { %730 = vmatpush1.bf16.msra.mxu1 %v1342_v7 }
 0x6b7   :  { %869 = vmatprep.subr.bf16.mxu1 %v1300_v17 }
 0x769   :  { %v603_v41 = vpop.f32.mrf.mxu1 }
 0x76a   :  { %v610_v42 = vadd.f32 %v603_v41, %v563_v40 }
 0x76b   :  { %v605_v43 = vpop.f32.mrf.mxu1 }
 0x76c   :  { %v611_v1 = vmul.f32 0.5, %v610_v42  ;;  %v615_v49 = vadd.f32 %v1250_v10, %v605_v43 }
 0x76d   :  { %v607_v44 = vpop.f32.mrf.mxu1 }
 0x76e   :  { %1046 = vtanh.f32 %v611_v1  ;;  %v1150_v44 = vmov 5  }
 0x76f   :  { %v608_v45 = vpop.f32.mrf.mxu1 }
 0x770   :  { %v776_v45 = vsel %vm239_vm1, 2, %v1150_v44 }
 0x771   :  { %vm777_vm15 = vcmp.gt.s32.totalorder %v1365_v38, %v776_v45 }
 0x77b   :  { %v1047_v46 = vpop.eup %1046 }
 0x77c   :  { %v613_v47 = vmul.f32 0.5, %v1047_v46 }
 0x77e   :  { %v614_v48 = vadd.f32 0.5, %v613_v47 }
 0x780   :  { %v616_v51 = vmul.f32 %v615_v49, %v614_v48 }
 0x782   :  { %v617_v52 = vadd.f32 %v616_v51, %v564_v50  ;;  %v782_v50 = vld [vmem:[#allocation2 + $0x60] sm:$0xff] }
 0x784   :  { %1048 = vtanh.f32 %v617_v52 }
 0x791   :  { %v1049_v53 = vpop.eup %1048 }
 0x792   :  { %v619_v54 = vsub.f32 %v559_v37, %v1049_v53 }
 0x794   :  { %621 = vrot.lane.b32.xlu0 %v619_v54, %s1145_s1 }
 0x806   :  { %v622_v17 = vpop.permute.xlu0 %621 }
 0x807   :  { %v624_v55 = vmul.f32 %v622_v17, %v614_v48 }
 0x809   :  { %626 = vrot.lane.b32.xlu1 %v624_v55, %s1145_s1 }
 0x87b   :  { %v627_v58 = vpop.permute.xlu1 %626 }
 0x87c   :  { %v629_v59 = vadd.f32 %v1049_v53, %v627_v58 }
 0x87e   :  { %v632_v60 = vsel %vm631_vm13, %v629_v59, %v559_v37 }
 0x87f   :  { %v638_v61 = vpack.c.bf16 %v632_v60, %v632_v60 }
 0x881   :  { %994 = vmatmul.mubr.msk.bf16.vlgmr.msra.gmra.mxu0 %vm343_vm9, %v638_v61 }
 0x882   :  { %797 = vmatpush1.bf16.msra.mxu0 %v1304_v18  ;;  %820 = vmatprep.mubr.bf16.mxu0 %v1144_v0 }
 0x883   :  { %798 = vmatprep.subr.bf16.mxu0 %v1308_v19 }
 0x886   :  { %799 = vmatpush1.bf16.msra.mxu0 %v1317_v21 }
 0x887   :  { %800 = vmatprep.subr.bf16.mxu0 %v1323_v8 }
 0x88a   :  { %801 = vmatpush1.bf16.msra.mxu0 %v1330_v9 }
 0x88b   :  { %802 = vmatprep.subr.bf16.mxu0 %v1336_v6 }
 0x88e   :  { %803 = vmatpush1.bf16.msra.mxu0 %v1342_v7 }
 0x941   :  { %v676_v63 = vpop.f32.mrf.mxu0 }
 0x942   :  { %v683_v11 = vadd.f32 %v676_v63, %v636_v62 }
 0x943   :  { %v678_v12 = vpop.f32.mrf.mxu0 }
 0x944   :  { %v684_v13 = vmul.f32 0.5, %v683_v11  ;;  %v688_v2 = vadd.f32 %v1250_v10, %v678_v12 }
 0x945   :  { %v680_v14 = vpop.f32.mrf.mxu0 }
 0x946   :  { %1050 = vtanh.f32 %v684_v13  ;;  %v1151_v14 = vmov 6  }
 0x947   :  { %v681_v15 = vpop.f32.mrf.mxu0 }
 0x948   :  { %v849_v15 = vsel %vm239_vm1, 1, %v1151_v14 }
 0x949   :  { %vm850_vm2 = vcmp.gt.s32.totalorder %v1365_v38, %v849_v15 }
 0x953   :  { %v1051_v16 = vpop.eup %1050 }
 0x954   :  { %v686_v22 = vmul.f32 0.5, %v1051_v16 }
 0x956   :  { %v687_v4 = vadd.f32 0.5, %v686_v22 }
 0x958   :  { %v689_v5 = vmul.f32 %v688_v2, %v687_v4 }
 0x95a   :  { %v690_v23 = vadd.f32 %v689_v5, %v637_v3  ;;  %v855_v3 = vld [vmem:[#allocation2 + $0x70] sm:$0xff] }
 0x95c   :  { %1052 = vtanh.f32 %v690_v23 }
 0x969   :  { %v1053_v24 = vpop.eup %1052 }
 0x96a   :  { %v692_v25 = vsub.f32 %v632_v60, %v1053_v24 }
 0x96c   :  { %694 = vrot.lane.b32.xlu0 %v692_v25, %s1145_s1 }
 0x9de   :  { %v695_v26 = vpop.permute.xlu0 %694 }
 0x9df   :  { %v697_v27 = vmul.f32 %v695_v26, %v687_v4 }
 0x9e1   :  { %699 = vrot.lane.b32.xlu1 %v697_v27, %s1145_s1 }
 0xa53   :  { %v700_v30 = vpop.permute.xlu1 %699 }
 0xa54   :  { %v702_v31 = vadd.f32 %v1053_v24, %v700_v30 }
 0xa56   :  { %v705_v32 = vsel %vm704_vm14, %v702_v31, %v632_v60  ;;  %v783_v60 = vld [vmem:[#allocation2 + $0x68] sm:$0xff] }
 0xa57   :  { %v711_v33 = vpack.c.bf16 %v705_v32, %v705_v32 }
 0xa59   :  { %995 = vmatmul.mubr.msk.bf16.vlgmr.msra.gmra.mxu1 %vm343_vm9, %v711_v33 }
 0xa5a   :  { %870 = vmatpush1.bf16.msra.mxu1 %v1304_v18  ;;  %893 = vmatprep.mubr.bf16.mxu1 %v1144_v0 }
 0xa5b   :  { %871 = vmatprep.subr.bf16.mxu1 %v1308_v19 }
 0xa5e   :  { %872 = vmatpush1.bf16.msra.mxu1 %v1317_v21 }
 0xa5f   :  { %873 = vmatprep.subr.bf16.mxu1 %v1323_v8  ;;  %v710_v8 = vld [vmem:[#allocation2 + $0x58] sm:$0xff] }
 0xa62   :  { %874 = vmatpush1.bf16.msra.mxu1 %v1330_v9 }
 0xa63   :  { %875 = vmatprep.subr.bf16.mxu1 %v1336_v6 }
 0xa66   :  { %876 = vmatpush1.bf16.msra.mxu1 %v1342_v7 }
 0xb19   :  { %v749_v35 = vpop.f32.mrf.mxu1 }
 0xb1a   :  { %v756_v36 = vadd.f32 %v749_v35, %v709_v34 }
 0xb1b   :  { %v751_v37 = vpop.f32.mrf.mxu1 }
 0xb1c   :  { %v757_v39 = vmul.f32 0.5, %v756_v36  ;;  %v761_v21 = vadd.f32 %v1250_v10, %v751_v37 }
 0xb1d   :  { %v753_v18 = vpop.f32.mrf.mxu1 }
 0xb1e   :  { %1054 = vtanh.f32 %v757_v39  ;;  %v1152_v18 = vmov 7  }
 0xb1f   :  { %v754_v0 = vpop.f32.mrf.mxu1 }
 0xb20   :  { %v922_v0 = vsel %vm239_vm1, 0, %v1152_v18 }
 0xb21   :  { %vm923_vm3 = vcmp.gt.s32.totalorder %v1365_v38, %v922_v0 }
 0xb2b   :  { %v1055_v40 = vpop.eup %1054 }
 0xb2c   :  { %v759_v19 = vmul.f32 0.5, %v1055_v40 }
 0xb2e   :  { %v760_v41 = vadd.f32 0.5, %v759_v19 }
 0xb30   :  { %v762_v42 = vmul.f32 %v761_v21, %v760_v41 }
 0xb32   :  { %v763_v9 = vadd.f32 %v762_v42, %v710_v8 }
 0xb34   :  { %1056 = vtanh.f32 %v763_v9 }
 0xb41   :  { %v1057_v6 = vpop.eup %1056 }
 0xb42   :  { %v765_v43 = vsub.f32 %v705_v32, %v1057_v6 }
 0xb44   :  { %767 = vrot.lane.b32.xlu0 %v765_v43, %s1145_s1 }
 0xbb6   :  { %v768_v7 = vpop.permute.xlu0 %767 }
 0xbb7   :  { %v770_v1 = vmul.f32 %v768_v7, %v760_v41 }
 0xbb9   :  { %772 = vrot.lane.b32.xlu1 %v770_v1, %s1145_s1 }
 0xc2b   :  { %v773_v46 = vpop.permute.xlu1 %772 }
 0xc2c   :  { %v775_v47 = vadd.f32 %v1057_v6, %v773_v46 }
 0xc2e   :  { %v778_v48 = vsel %vm777_vm15, %v775_v47, %v705_v32  ;;  %v856_v32 = vld [vmem:[#allocation2 + $0x78] sm:$0xff] }
 0xc2f   :  { %v784_v49 = vpack.c.bf16 %v778_v48, %v778_v48 }
 0xc31   :  { %996 = vmatmul.mubr.msk.bf16.vlgmr.msra.gmra.mxu0 %vm343_vm9, %v784_v49 }
 0xcf1   :  { %v822_v51 = vpop.f32.mrf.mxu0 }
 0xcf2   :  { %v829_v52 = vadd.f32 %v822_v51, %v782_v50 }
 0xcf3   :  { %v824_v53 = vpop.f32.mrf.mxu0 }
 0xcf4   :  { %v830_v54 = vmul.f32 0.5, %v829_v52  ;;  %v834_v59 = vadd.f32 %v1250_v10, %v824_v53 }
 0xcf5   :  { %v826_v17 = vpop.f32.mrf.mxu0 }
 0xcf6   :  { %1058 = vtanh.f32 %v830_v54 }
 0xcf7   :  { %v827_v55 = vpop.f32.mrf.mxu0 }
 0xd03   :  { %v1059_v56 = vpop.eup %1058 }
 0xd04   :  { %v832_v57 = vmul.f32 0.5, %v1059_v56 }
 0xd06   :  { %v833_v58 = vadd.f32 0.5, %v832_v57 }
 0xd08   :  { %v835_v61 = vmul.f32 %v834_v59, %v833_v58 }
 0xd0a   :  { %v836_v62 = vadd.f32 %v835_v61, %v783_v60 }
 0xd0c   :  { %1060 = vtanh.f32 %v836_v62 }
 0xd19   :  { %v1061_v63 = vpop.eup %1060 }
 0xd1a   :  { %v838_v11 = vsub.f32 %v778_v48, %v1061_v63 }
 0xd1c   :  { %840 = vrot.lane.b32.xlu0 %v838_v11, %s1145_s1 }
 0xd8e   :  { %v841_v12 = vpop.permute.xlu0 %840 }
 0xd8f   :  { %v843_v13 = vmul.f32 %v841_v12, %v833_v58 }
 0xd91   :  { %845 = vrot.lane.b32.xlu1 %v843_v13, %s1145_s1 }
 0xe03   :  { %v846_v16 = vpop.permute.xlu1 %845 }
 0xe04   :  { %v848_v22 = vadd.f32 %v1061_v63, %v846_v16 }
 0xe06   :  { %v851_v4 = vsel %vm850_vm2, %v848_v22, %v778_v48 }
 0xe07   :  { %v857_v2 = vpack.c.bf16 %v851_v4, %v851_v4 }
 0xe09   :  { %997 = vmatmul.mubr.msk.bf16.vlgmr.msra.gmra.mxu1 %vm343_vm9, %v857_v2 }
 0xec9   :  { %v895_v5 = vpop.f32.mrf.mxu1 }
 0xeca   :  { %v902_v23 = vadd.f32 %v895_v5, %v855_v3 }
 0xecb   :  { %v897_v24 = vpop.f32.mrf.mxu1 }
 0xecc   :  { %v903_v25 = vmul.f32 0.5, %v902_v23  ;;  %v907_v31 = vadd.f32 %v1250_v10, %v897_v24 }
 0xecd   :  { %v899_v26 = vpop.f32.mrf.mxu1 }
 0xece   :  { %1062 = vtanh.f32 %v903_v25 }
 0xecf   :  { %v900_v27 = vpop.f32.mrf.mxu1 }
 0xedb   :  { %v1063_v28 = vpop.eup %1062 }
 0xedc   :  { %v905_v29 = vmul.f32 0.5, %v1063_v28 }
 0xede   :  { %v906_v30 = vadd.f32 0.5, %v905_v29 }
 0xee0   :  { %v908_v33 = vmul.f32 %v907_v31, %v906_v30 }
 0xee2   :  { %v909_v34 = vadd.f32 %v908_v33, %v856_v32 }
 0xee4   :  { %1064 = vtanh.f32 %v909_v34 }
 0xef1   :  { %v1065_v35 = vpop.eup %1064 }
 0xef2   :  { %v911_v36 = vsub.f32 %v851_v4, %v1065_v35 }
 0xef4   :  { %913 = vrot.lane.b32.xlu0 %v911_v36, %s1145_s1 }
 0xf66   :  { %v914_v37 = vpop.permute.xlu0 %913 }
 0xf67   :  { %v916_v39 = vmul.f32 %v914_v37, %v906_v30 }
 0xf69   :  { %918 = vrot.lane.b32.xlu1 %v916_v39, %s1145_s1 }
 0xfdb   :  { %v919_v40 = vpop.permute.xlu1 %918 }
 0xfdc   :  { %v921_v19 = vadd.f32 %v1065_v35, %v919_v40 }
 0xfde   :  { %v924_v10 = vsel %vm923_vm3, %v921_v19, %v851_v4 }
 0xfdf   :  { %926 = vrot.lane.b32.xlu0 %v924_v10, %s1153_s21 }
0x1051   :  { %v927_v41 = vpop.permute.xlu0 %926 }
0x1052   :  { %v929_v21 = vadd.f32 %v927_v41, %v924_v10 }
0x1054   :  { %930 = vst.msk [vmem:[#allocation8] sm:$0xff] %vm118_vm0, %v929_v21 }
0x1055   :  { %1117 = shalt.err (!%p1114_p1)
}
0x1056   :  { %940 = dma.vmem_to_hbm [thread:$0]  %s938_s23, 128, %s1474_s7, [#allocation5]  }
0x1057   :  { %1134 = dma.done.wait [#allocation5], 128  }
0x1058   :  { %1135 = vsyncadd [#allocation5], 4294967168 }
0x1059   :  { %944 = vsyncpa [#allocation4], 1 }
0x105a   :  { %945 = vsyncpa [#allocation7], 1 }
0x105b   :  { %946 = vsyncpa [#allocation5], 1 }

</bundles_post_ra>
